<compile_context>
chip_gen: v5e
topology: v5e:2x2
jax: 0.10.0
libtpu: 0.0.40
codegen_flags: <defaults>
</compile_context>

<pallas_src>
import jax
import jax.numpy as jnp
from jax.experimental import pallas as pl
from jax.experimental.pallas import tpu as pltpu

INPUT_SIZE = 768    # BERT hidden size (module default input_size=768)
HIDDEN_SIZE = 256   # GRU hidden size
OUTPUT_SIZE = 64    # fc output size


def _vmem_capacity_bytes():
    """Physical VMEM of the attached TPU (conservative 64 MiB fallback)."""
    try:
        return int(pltpu.get_tpu_info().vmem_capacity_bytes)
    except Exception:
        pass
    try:
        kind = jax.devices()[0].device_kind.lower()
        if "v7" in kind:
            return 64 * 1024 * 1024
        return 128 * 1024 * 1024
    except Exception:
        return 64 * 1024 * 1024


def _pick_batch_tile(B, target=8):
    """Batch tile for the [tb, 1] output block: tb % 8 == 0 or tb == B.

    Prefers tilings with >= 2 batch tiles so the 'parallel' grid axis can be
    sharded across both v7x TensorCores (no-op on v5e/v6e).
    """
    cands = [t for t in range(8, min(B, max(target, 8)) + 1, 8) if B % t == 0]
    two_plus = [t for t in cands if B // t >= 2]
    if two_plus:
        return max(two_plus)
    if cands:
        return max(cands)
    return B


def _pick_seq_tile(S, target, dtype):
    """Largest ts <= target with S % ts == 0 and (ts % align == 0 or ts == S).

    align is 16 for 2-byte dtypes (bf16 sublane packing) and 8 otherwise, so
    the hs block's (ts, 768) trailing dims always satisfy the tiling rule.
    """
    align = 16 if jnp.dtype(dtype).itemsize == 2 else 8
    for cand in range(min(S, target), 0, -1):
        if S % cand == 0 and (cand % align == 0 or cand == S):
            return cand
    return S


def _make_kernel(tb, seq_len):
    H = HIDDEN_SIZE
    inv_s = 1.0 / float(seq_len)

    def kernel(hs1_ref, hs2_ref, w_ih_t_ref, b_rz_ref, b_in_ref, b_hn_ref,
               w_fc_t_ref, b_fc_ref, out_ref, acc_ref):
        s = pl.program_id(1)

        @pl.when(s == 0)
        def _():
            acc_ref[...] = jnp.zeros_like(acc_ref)

        # Streamed mean-pool: accumulate sequence partial sums in f32
        # (hs tiles may arrive as bf16 or f32; cast per-tile before the add).
        acc_ref[0:tb, :] += jnp.sum(hs1_ref[...].astype(jnp.float32), axis=1)
        acc_ref[tb:2 * tb, :] += jnp.sum(hs2_ref[...].astype(jnp.float32), axis=1)

        @pl.when(s == pl.num_programs(1) - 1)
        def _():
            # Both branches fused: rows [0:tb] = sentence1, [tb:2tb] = sentence2.
            pooled = acc_ref[...] * jnp.float32(inv_s)               # [2tb, D]

            # Single GRU step, batch_first, seq_len == 1, h0 == 0.
            # PyTorch gate order in weight_ih_l0 / biases: [r, z, n].
            # weight_hh_l0 is mathematically inert (h0 == 0, seq_len == 1).
            gi = jnp.dot(pooled.astype(jnp.bfloat16), w_ih_t_ref[...],
                         preferred_element_type=jnp.float32)         # [2tb, 3H]
            rz = jax.nn.sigmoid(gi[:, 0:2 * H] + b_rz_ref[...])      # b_ih + b_hh
            r = rz[:, 0:H]
            z = rz[:, H:2 * H]
            n = jnp.tanh(gi[:, 2 * H:3 * H] + b_in_ref[...] + r * b_hn_ref[...])
            h = (1.0 - z) * n                                         # + z*h0, h0 == 0

            # fc:  h @ W_fc.T + b_fc  ->  [2tb, O]
            o = jnp.dot(h.astype(jnp.bfloat16), w_fc_t_ref[...],
                        preferred_element_type=jnp.float32) + b_fc_ref[...]
            o1 = o[0:tb, :]
            o2 = o[tb:2 * tb, :]

            # torch.cosine_similarity(out1, out2, dim=1), eps = 1e-8,
            # then 2.5*x + 2.5.  rsqrt(max(||x||^2, eps^2)) == 1/max(||x||, eps).
            eps = jnp.float32(1e-8)
            num = jnp.sum(o1 * o2, axis=1, keepdims=True)
            sq1 = jnp.sum(o1 * o1, axis=1, keepdims=True)
            sq2 = jnp.sum(o2 * o2, axis=1, keepdims=True)
            inv_n1 = jax.lax.rsqrt(jnp.maximum(sq1, eps * eps))
            inv_n2 = jax.lax.rsqrt(jnp.maximum(sq2, eps * eps))
            out_ref[...] = 2.5 * (num * inv_n1 * inv_n2) + 2.5

    return kernel


def prepare_params(w_ih, b_ih, b_hh, w_fc, b_fc):
    """One-time host-side preprocessing (transpose, bias combine, bf16 weights)."""
    H, O = HIDDEN_SIZE, OUTPUT_SIZE
    w_ih = jnp.asarray(w_ih, jnp.float32)          # [3H, D]
    b_ih = jnp.asarray(b_ih, jnp.float32)          # [3H]
    b_hh = jnp.asarray(b_hh, jnp.float32)          # [3H]
    w_fc = jnp.asarray(w_fc, jnp.float32)          # [O, H]
    b_fc = jnp.asarray(b_fc, jnp.float32)          # [O]
    return dict(
        w_ih_t=w_ih.T.astype(jnp.bfloat16),                          # [D, 3H]
        b_rz=(b_ih[:2 * H] + b_hh[:2 * H]).reshape(1, 2 * H),        # [1, 2H]
        b_in=b_ih[2 * H:].reshape(1, H),                             # [1, H]
        b_hn=b_hh[2 * H:].reshape(1, H),                             # [1, H]
        w_fc_t=w_fc.T.astype(jnp.bfloat16),                          # [H, O]
        b_fc=b_fc.reshape(1, O),                                     # [1, O]
    )


def similar_model_forward(hs1, hs2, params, *, tb_target=8, ts_target=None,
                          vmem_limit_bytes=None):
    """hs1, hs2: [B, S, D] BERT last_hidden_state stand-ins (f32 or bf16).

    Streams the inputs exactly as given (no wrapper-side dtype conversion).
    Returns a [B] f32 vector of 2.5*cos + 2.5 scores.
    """
    B, S, D = hs1.shape
    assert D == INPUT_SIZE and hs2.shape == (B, S, D)
    assert hs1.dtype == hs2.dtype
    H, O = HIDDEN_SIZE, OUTPUT_SIZE

    # Per-generation tiling / scoped-VMEM budget.
    vmem_phys = _vmem_capacity_bytes()
    big_vmem = vmem_phys >= 100 * 1024 * 1024      # v5e / v6e (128 MiB)
    itemsize = jnp.dtype(hs1.dtype).itemsize
    if ts_target is None:
        if big_vmem:
            ts_target = 1024 if itemsize == 2 else 512
        else:                                       # v7x: 64 MiB VMEM per TC
            ts_target = 512 if itemsize == 2 else 256
    if vmem_limit_bytes is None:
        vmem_limit_bytes = (96 if big_vmem else 48) * 1024 * 1024

    tb = _pick_batch_tile(B, tb_target)
    ts = _pick_seq_tile(S, ts_target, hs1.dtype)
    grid = (B // tb, S // ts)

    kernel = _make_kernel(tb, S)

    const2d = lambda b, s: (0, 0)
    in_specs = [
        pl.BlockSpec((tb, ts, D), lambda b, s: (b, s, 0)),   # hs1 (streamed)
        pl.BlockSpec((tb, ts, D), lambda b, s: (b, s, 0)),   # hs2 (streamed)
        pl.BlockSpec((D, 3 * H), const2d),                   # w_ih_t (resident, bf16)
        pl.BlockSpec((1, 2 * H), const2d),                   # b_rz
        pl.BlockSpec((1, H), const2d),                       # b_in
        pl.BlockSpec((1, H), const2d),                       # b_hn
        pl.BlockSpec((H, O), const2d),                       # w_fc_t (resident, bf16)
        pl.BlockSpec((1, O), const2d),                       # b_fc
    ]
    out_specs = pl.BlockSpec((tb, 1), lambda b, s: (b, 0))

    out = pl.pallas_call(
        kernel,
        out_shape=jax.ShapeDtypeStruct((B, 1), jnp.float32),
        grid=grid,
        in_specs=in_specs,
        out_specs=out_specs,
        scratch_shapes=[pltpu.VMEM((2 * tb, D), jnp.float32)],
        compiler_params=pltpu.CompilerParams(
            dimension_semantics=("parallel", "arbitrary"),
            vmem_limit_bytes=vmem_limit_bytes),
    )(hs1, hs2,
      params["w_ih_t"], params["b_rz"], params["b_in"], params["b_hn"],
      params["w_fc_t"], params["b_fc"])
    return out[:, 0]


def fake_bert_last_hidden_state(ids, mask, emb_table):
    # TODO(synk): BertModel.from_pretrained('bert-base-chinese') has no clean
    # Pallas equivalent (external pretrained checkpoint); replaced by a
    # deterministic embedding lookup producing last_hidden_state with the same
    # [B, S, 768] shape.  The table is bf16 so the producer emits bf16 natively
    # (no separate convert pass).  attention_mask is therefore unused here.
    del mask
    return emb_table[ids]


def _reference_forward(hs1, hs2, w_ih, b_ih, b_hh, w_fc, b_fc):
    """Pure-JAX f32 reference of the post-BERT math (for a sanity check)."""
    H = HIDDEN_SIZE
    eps = 1e-8

    def branch(hs):
        pooled = jnp.mean(hs.astype(jnp.float32), axis=1)               # [B, D]
        gi = pooled @ w_ih.T + b_ih                                      # [B, 3H]
        r = jax.nn.sigmoid(gi[:, :H] + b_hh[:H])
        z = jax.nn.sigmoid(gi[:, H:2 * H] + b_hh[H:2 * H])
        n = jnp.tanh(gi[:, 2 * H:] + r * b_hh[2 * H:])
        h = (1.0 - z) * n                                                # h0 == 0
        return h @ w_fc.T + b_fc                                         # [B, O]

    o1, o2 = branch(hs1), branch(hs2)
    n1 = jnp.maximum(jnp.linalg.norm(o1, axis=1), eps)
    n2 = jnp.maximum(jnp.linalg.norm(o2, axis=1), eps)
    cos = jnp.sum(o1 * o2, axis=1) / (n1 * n2)
    return 2.5 * cos + 2.5


if __name__ == "__main__":
    key = jax.random.PRNGKey(0)
    B, S, VOCAB = 2, 8, 128
    D, H, O = INPUT_SIZE, HIDDEN_SIZE, OUTPUT_SIZE
    ks = jax.random.split(key, 10)

    # Synthetic "BERT" embedding table (bf16 so the producer emits bf16) and
    # token ids / masks.
    emb_table = (jax.random.normal(ks[0], (VOCAB, D), jnp.float32) * 0.02
                 ).astype(jnp.bfloat16)
    s1_ids = jax.random.randint(ks[1], (B, S), 0, VOCAB)
    s2_ids = jax.random.randint(ks[2], (B, S), 0, VOCAB)
    s1_mask = jnp.ones((B, S), jnp.int32)
    s2_mask = jnp.ones((B, S), jnp.int32)

    # GRU params: weight_ih_l0 [3H, D] xavier_uniform (as in module __init__),
    # biases PyTorch default uniform(-1/sqrt(H), 1/sqrt(H)).
    bound_ih = (6.0 / (3 * H + D)) ** 0.5
    w_ih = jax.random.uniform(ks[3], (3 * H, D), jnp.float32, -bound_ih, bound_ih)
    kb = 1.0 / (H ** 0.5)
    b_ih = jax.random.uniform(ks[4], (3 * H,), jnp.float32, -kb, kb)
    b_hh = jax.random.uniform(ks[5], (3 * H,), jnp.float32, -kb, kb)
    # weight_hh_l0 is mathematically inert here (h0 == 0, seq_len == 1).

    # fc params: nn.Linear(H, O) default init.
    w_fc = jax.random.uniform(ks[6], (O, H), jnp.float32, -kb, kb)
    b_fc = jax.random.uniform(ks[7], (O,), jnp.float32, -kb, kb)

    params = prepare_params(w_ih, b_ih, b_hh, w_fc, b_fc)

    hs1 = fake_bert_last_hidden_state(s1_ids, s1_mask, emb_table)  # [B, S, D] bf16
    hs2 = fake_bert_last_hidden_state(s2_ids, s2_mask, emb_table)  # [B, S, D] bf16

    out = similar_model_forward(hs1, hs2, params)
    jax.block_until_ready(out)

    assert out.shape == (B,) and out.dtype == jnp.float32
    assert bool(jnp.all(jnp.isfinite(out)))

    # Sanity-check against a pure-JAX f32 reference of the same math
    # (loose tolerance: bf16 weight matmuls in the epilogue).
    ref = _reference_forward(hs1, hs2, w_ih, b_ih, b_hh, w_fc, b_fc)
    assert bool(jnp.all(jnp.abs(out - ref) < 0.1)), (out, ref)

    print("KERNEL_OK")
</pallas_src>

<mosaic_0001>
module attributes {stable_mosaic.version = 11 : i64} {
  func.func @kernel(%arg0: i32, %arg1: i32, %arg2: memref<2x8x768xbf16, #tpu.memory_space<vmem>>, %arg3: memref<2x8x768xbf16, #tpu.memory_space<vmem>>, %arg4: memref<768x768xbf16, #tpu.memory_space<vmem>>, %arg5: memref<1x512xf32, #tpu.memory_space<vmem>>, %arg6: memref<1x256xf32, #tpu.memory_space<vmem>>, %arg7: memref<1x256xf32, #tpu.memory_space<vmem>>, %arg8: memref<256x64xbf16, #tpu.memory_space<vmem>>, %arg9: memref<1x64xf32, #tpu.memory_space<vmem>>, %arg10: memref<2x1xf32, #tpu.memory_space<vmem>>, %arg11: memref<4x768xf32, #tpu.memory_space<vmem>>) attributes {dimension_semantics = [#tpu.dimension_semantics<parallel>, #tpu.dimension_semantics<arbitrary>], iteration_bounds = array<i64: 1, 1>, scalar_prefetch = 0 : i64, scratch_operands = 1 : i64, tpu.core_type = #tpu.core_type<tc>, window_params = [{transform_indices = @transform_0, window_bounds = array<i64: 2, 8, 768>}, {transform_indices = @transform_1, window_bounds = array<i64: 2, 8, 768>}, {pipeline_mode = #tpu.pipeline_mode<synchronous>, transform_indices = @transform_2, window_bounds = array<i64: 768, 768>}, {pipeline_mode = #tpu.pipeline_mode<synchronous>, transform_indices = @transform_3, window_bounds = array<i64: 1, 512>}, {pipeline_mode = #tpu.pipeline_mode<synchronous>, transform_indices = @transform_4, window_bounds = array<i64: 1, 256>}, {pipeline_mode = #tpu.pipeline_mode<synchronous>, transform_indices = @transform_5, window_bounds = array<i64: 1, 256>}, {pipeline_mode = #tpu.pipeline_mode<synchronous>, transform_indices = @transform_6, window_bounds = array<i64: 256, 64>}, {pipeline_mode = #tpu.pipeline_mode<synchronous>, transform_indices = @transform_7, window_bounds = array<i64: 1, 64>}, {transform_indices = @transform_8, window_bounds = array<i64: 2, 1>}]} {
    %c0_i32 = arith.constant 0 : i32
    %0 = arith.cmpi eq, %arg1, %c0_i32 : i32
    %1 = arith.extui %0 : i1 to i32
    %c0_i32_0 = arith.constant 0 : i32
    %2 = arith.cmpi ne, %1, %c0_i32_0 : i32
    scf.if %2 {
      %cst_16 = arith.constant 0.000000e+00 : f32
      %18 = vector.broadcast %cst_16 : f32 to vector<4x768xf32>
      %c0_17 = arith.constant 0 : index
      %c0_18 = arith.constant 0 : index
      %19 = vector.load %arg11[%c0_17, %c0_18] : memref<4x768xf32, #tpu.memory_space<vmem>>, vector<4x768xf32>
      tpu.vector_store %arg11[%c0_17, %c0_18], %18 {strides = array<i32>} : memref<4x768xf32, #tpu.memory_space<vmem>>, vector<4x768xf32>,
    } else {
    }
    %c0 = arith.constant 0 : index
    %c0_1 = arith.constant 0 : index
    %3 = vector.load %arg11[%c0, %c0_1] : memref<4x768xf32, #tpu.memory_space<vmem>>, vector<2x768xf32>
    %c0_2 = arith.constant 0 : index
    %c0_3 = arith.constant 0 : index
    %c0_4 = arith.constant 0 : index
    %4 = vector.load %arg2[%c0_2, %c0_3, %c0_4] : memref<2x8x768xbf16, #tpu.memory_space<vmem>>, vector<2x8x768xbf16>
    %5 = arith.extf %4 : vector<2x8x768xbf16> to vector<2x8x768xf32>
    %cst = arith.constant dense<0.000000e+00> : vector<2x768xf32>
    %6 = vector.multi_reduction <add>, %5, %cst [1] : vector<2x8x768xf32> to vector<2x768xf32>
    %7 = arith.addf %3, %6 : vector<2x768xf32>
    %c0_5 = arith.constant 0 : index
    %c0_6 = arith.constant 0 : index
    %8 = vector.load %arg11[%c0_5, %c0_6] : memref<4x768xf32, #tpu.memory_space<vmem>>, vector<2x768xf32>
    tpu.vector_store %arg11[%c0_5, %c0_6], %7 {strides = array<i32>} : memref<4x768xf32, #tpu.memory_space<vmem>>, vector<2x768xf32>,
    %c2 = arith.constant 2 : index
    %c0_7 = arith.constant 0 : index
    %9 = vector.load %arg11[%c2, %c0_7] : memref<4x768xf32, #tpu.memory_space<vmem>>, vector<2x768xf32>
    %c0_8 = arith.constant 0 : index
    %c0_9 = arith.constant 0 : index
    %c0_10 = arith.constant 0 : index
    %10 = vector.load %arg3[%c0_8, %c0_9, %c0_10] : memref<2x8x768xbf16, #tpu.memory_space<vmem>>, vector<2x8x768xbf16>
    %11 = arith.extf %10 : vector<2x8x768xbf16> to vector<2x8x768xf32>
    %cst_11 = arith.constant dense<0.000000e+00> : vector<2x768xf32>
    %12 = vector.multi_reduction <add>, %11, %cst_11 [1] : vector<2x8x768xf32> to vector<2x768xf32>
    %13 = arith.addf %9, %12 : vector<2x768xf32>
    %c2_12 = arith.constant 2 : index
    %c0_13 = arith.constant 0 : index
    %14 = vector.load %arg11[%c2_12, %c0_13] : memref<4x768xf32, #tpu.memory_space<vmem>>, vector<2x768xf32>
    tpu.vector_store %arg11[%c2_12, %c0_13], %13 {strides = array<i32>} : memref<4x768xf32, #tpu.memory_space<vmem>>, vector<2x768xf32>,
    %c0_i32_14 = arith.constant 0 : i32
    %15 = arith.cmpi eq, %arg1, %c0_i32_14 : i32
    %16 = arith.extui %15 : i1 to i32
    %c0_i32_15 = arith.constant 0 : i32
    %17 = arith.cmpi ne, %16, %c0_i32_15 : i32
    scf.if %17 {
      %c0_16 = arith.constant 0 : index
      %c0_17 = arith.constant 0 : index
      %18 = vector.load %arg11[%c0_16, %c0_17] : memref<4x768xf32, #tpu.memory_space<vmem>>, vector<4x768xf32>
      %cst_18 = arith.constant 1.250000e-01 : f32
      %19 = vector.broadcast %cst_18 : f32 to vector<4x768xf32>
      %20 = arith.mulf %18, %19 : vector<4x768xf32>
      %21 = arith.truncf %20 : vector<4x768xf32> to vector<4x768xbf16>
      %c0_19 = arith.constant 0 : index
      %c0_20 = arith.constant 0 : index
      %22 = vector.load %arg4[%c0_19, %c0_20] : memref<768x768xbf16, #tpu.memory_space<vmem>>, vector<768x768xbf16>
      %cst_21 = arith.constant dense<0.000000e+00> : vector<4x768xf32>
      %23 = tpu.matmul %21, %22, %cst_21 {dimension_numbers = #tpu.dot_dimension_numbers<[1], [0], [0], [1], [0, 0, 1, 1], [], []>} : vector<4x768xbf16>, vector<768x768xbf16>, vector<4x768xf32> -> vector<4x768xf32>
      %24 = vector.extract_strided_slice %23 {offsets = [0, 0], sizes = [4, 512], strides = [1, 1]} : vector<4x768xf32> to vector<4x512xf32>
      %c0_22 = arith.constant 0 : index
      %c0_23 = arith.constant 0 : index
      %25 = vector.load %arg5[%c0_22, %c0_23] : memref<1x512xf32, #tpu.memory_space<vmem>>, vector<1x512xf32>
      %26 = vector.broadcast %25 : vector<1x512xf32> to vector<4x512xf32>
      %27 = arith.addf %24, %26 : vector<4x512xf32>
      %28 = arith.negf %27 : vector<4x512xf32>
      %29 = math.exp %28 : vector<4x512xf32>
      %cst_24 = arith.constant 1.000000e+00 : f32
      %30 = vector.broadcast %cst_24 : f32 to vector<4x512xf32>
      %31 = arith.addf %30, %29 : vector<4x512xf32>
      %32 = arith.divf %30, %31 : vector<4x512xf32>
      %33 = vector.extract_strided_slice %32 {offsets = [0, 0], sizes = [4, 256], strides = [1, 1]} : vector<4x512xf32> to vector<4x256xf32>
      %34 = vector.extract_strided_slice %32 {offsets = [0, 256], sizes = [4, 256], strides = [1, 1]} : vector<4x512xf32> to vector<4x256xf32>
      %35 = vector.extract_strided_slice %23 {offsets = [0, 512], sizes = [4, 256], strides = [1, 1]} : vector<4x768xf32> to vector<4x256xf32>
      %c0_25 = arith.constant 0 : index
      %c0_26 = arith.constant 0 : index
      %36 = vector.load %arg6[%c0_25, %c0_26] : memref<1x256xf32, #tpu.memory_space<vmem>>, vector<1x256xf32>
      %37 = vector.broadcast %36 : vector<1x256xf32> to vector<4x256xf32>
      %38 = arith.addf %35, %37 : vector<4x256xf32>
      %c0_27 = arith.constant 0 : index
      %c0_28 = arith.constant 0 : index
      %39 = vector.load %arg7[%c0_27, %c0_28] : memref<1x256xf32, #tpu.memory_space<vmem>>, vector<1x256xf32>
      %40 = vector.broadcast %39 : vector<1x256xf32> to vector<4x256xf32>
      %41 = arith.mulf %33, %40 : vector<4x256xf32>
      %42 = arith.addf %38, %41 : vector<4x256xf32>
      %43 = math.tanh %42 : vector<4x256xf32>
      %cst_29 = arith.constant 1.000000e+00 : f32
      %44 = vector.broadcast %cst_29 : f32 to vector<4x256xf32>
      %45 = arith.subf %44, %34 : vector<4x256xf32>
      %46 = arith.mulf %45, %43 : vector<4x256xf32>
      %47 = arith.truncf %46 : vector<4x256xf32> to vector<4x256xbf16>
      %c0_30 = arith.constant 0 : index
      %c0_31 = arith.constant 0 : index
      %48 = vector.load %arg8[%c0_30, %c0_31] : memref<256x64xbf16, #tpu.memory_space<vmem>>, vector<256x64xbf16>
      %cst_32 = arith.constant dense<0.000000e+00> : vector<4x64xf32>
      %49 = tpu.matmul %47, %48, %cst_32 {dimension_numbers = #tpu.dot_dimension_numbers<[1], [0], [0], [1], [0, 0, 1, 1], [], []>} : vector<4x256xbf16>, vector<256x64xbf16>, vector<4x64xf32> -> vector<4x64xf32>
      %c0_33 = arith.constant 0 : index
      %c0_34 = arith.constant 0 : index
      %50 = vector.load %arg9[%c0_33, %c0_34] : memref<1x64xf32, #tpu.memory_space<vmem>>, vector<1x64xf32>
      %51 = vector.broadcast %50 : vector<1x64xf32> to vector<4x64xf32>
      %52 = arith.addf %49, %51 : vector<4x64xf32>
      %53 = vector.extract_strided_slice %52 {offsets = [0, 0], sizes = [2, 64], strides = [1, 1]} : vector<4x64xf32> to vector<2x64xf32>
      %54 = vector.extract_strided_slice %52 {offsets = [2, 0], sizes = [2, 64], strides = [1, 1]} : vector<4x64xf32> to vector<2x64xf32>
      %55 = arith.mulf %53, %54 : vector<2x64xf32>
      %cst_35 = arith.constant dense<0.000000e+00> : vector<2xf32>
      %56 = vector.multi_reduction <add>, %55, %cst_35 [1] : vector<2x64xf32> to vector<2xf32>
      %57 = vector.shape_cast %56 : vector<2xf32> to vector<2x1xf32>
      %58 = arith.mulf %53, %53 : vector<2x64xf32>
      %cst_36 = arith.constant dense<0.000000e+00> : vector<2xf32>
      %59 = vector.multi_reduction <add>, %58, %cst_36 [1] : vector<2x64xf32> to vector<2xf32>
      %60 = vector.shape_cast %59 : vector<2xf32> to vector<2x1xf32>
      %61 = arith.mulf %54, %54 : vector<2x64xf32>
      %cst_37 = arith.constant dense<0.000000e+00> : vector<2xf32>
      %62 = vector.multi_reduction <add>, %61, %cst_37 [1] : vector<2x64xf32> to vector<2xf32>
      %63 = vector.shape_cast %62 : vector<2xf32> to vector<2x1xf32>
      %cst_38 = arith.constant 9.99999993E-9 : f32
      %cst_39 = arith.constant 9.99999993E-9 : f32
      %64 = arith.mulf %cst_38, %cst_39 : f32
      %65 = vector.broadcast %64 : f32 to vector<2x1xf32>
      %66 = arith.maximumf %60, %65 : vector<2x1xf32>
      %67 = math.rsqrt %66 : vector<2x1xf32>
      %cst_40 = arith.constant 9.99999993E-9 : f32
      %cst_41 = arith.constant 9.99999993E-9 : f32
      %68 = arith.mulf %cst_40, %cst_41 : f32
      %69 = vector.broadcast %68 : f32 to vector<2x1xf32>
      %70 = arith.maximumf %63, %69 : vector<2x1xf32>
      %71 = math.rsqrt %70 : vector<2x1xf32>
      %72 = arith.mulf %57, %67 : vector<2x1xf32>
      %73 = arith.mulf %72, %71 : vector<2x1xf32>
      %cst_42 = arith.constant 2.500000e+00 : f32
      %74 = vector.broadcast %cst_42 : f32 to vector<2x1xf32>
      %75 = arith.mulf %74, %73 : vector<2x1xf32>
      %cst_43 = arith.constant 2.500000e+00 : f32
      %76 = vector.broadcast %cst_43 : f32 to vector<2x1xf32>
      %77 = arith.addf %75, %76 : vector<2x1xf32>
      %c0_44 = arith.constant 0 : index
      %c0_45 = arith.constant 0 : index
      %78 = vector.load %arg10[%c0_44, %c0_45] : memref<2x1xf32, #tpu.memory_space<vmem>>, vector<2x1xf32>
      tpu.vector_store %arg10[%c0_44, %c0_45], %77 {strides = array<i32>} : memref<2x1xf32, #tpu.memory_space<vmem>>, vector<2x1xf32>,
    } else {
    }
    return
  }
  func.func @transform_0(%arg0: i32, %arg1: i32) -> (i32, i32, i32) {
    %c0_i32 = arith.constant 0 : i32
    %c0_i32_0 = arith.constant 0 : i32
    return %arg0, %arg1, %c0_i32 : i32, i32, i32
  }
  func.func @transform_1(%arg0: i32, %arg1: i32) -> (i32, i32, i32) {
    %c0_i32 = arith.constant 0 : i32
    %c0_i32_0 = arith.constant 0 : i32
    return %arg0, %arg1, %c0_i32 : i32, i32, i32
  }
  func.func @transform_2(%arg0: i32, %arg1: i32) -> (i32, i32) {
    %c0_i32 = arith.constant 0 : i32
    %c0_i32_0 = arith.constant 0 : i32
    %c0_i32_1 = arith.constant 0 : i32
    return %c0_i32, %c0_i32_0 : i32, i32
  }
  func.func @transform_3(%arg0: i32, %arg1: i32) -> (i32, i32) {
    %c0_i32 = arith.constant 0 : i32
    %c0_i32_0 = arith.constant 0 : i32
    %c0_i32_1 = arith.constant 0 : i32
    return %c0_i32, %c0_i32_0 : i32, i32
  }
  func.func @transform_4(%arg0: i32, %arg1: i32) -> (i32, i32) {
    %c0_i32 = arith.constant 0 : i32
    %c0_i32_0 = arith.constant 0 : i32
    %c0_i32_1 = arith.constant 0 : i32
    return %c0_i32, %c0_i32_0 : i32, i32
  }
  func.func @transform_5(%arg0: i32, %arg1: i32) -> (i32, i32) {
    %c0_i32 = arith.constant 0 : i32
    %c0_i32_0 = arith.constant 0 : i32
    %c0_i32_1 = arith.constant 0 : i32
    return %c0_i32, %c0_i32_0 : i32, i32
  }
  func.func @transform_6(%arg0: i32, %arg1: i32) -> (i32, i32) {
    %c0_i32 = arith.constant 0 : i32
    %c0_i32_0 = arith.constant 0 : i32
    %c0_i32_1 = arith.constant 0 : i32
    return %c0_i32, %c0_i32_0 : i32, i32
  }
  func.func @transform_7(%arg0: i32, %arg1: i32) -> (i32, i32) {
    %c0_i32 = arith.constant 0 : i32
    %c0_i32_0 = arith.constant 0 : i32
    %c0_i32_1 = arith.constant 0 : i32
    return %c0_i32, %c0_i32_0 : i32, i32
  }
  func.func @transform_8(%arg0: i32, %arg1: i32) -> (i32, i32) {
    %c0_i32 = arith.constant 0 : i32
    %c0_i32_0 = arith.constant 0 : i32
    return %arg0, %c0_i32 : i32, i32
  }
}

</mosaic_0001>

<bundles_post_ra>
// kernel: tpu_custom_call.1
= control target key start
LH: loop header
LB: loop body
LE: loop exit
PB: predicated region body
PF: predicated region fallthrough
CT: control target
= control target key end

     0   :  { %13 = vsyncpa [#allocation4], 0  ;;  %s5100_s0 = inlined_call_operand.hbm [shape: bf16[2,8,768], index: 0, kind: input, shape index: {}]   ;;  %s5101_s1 = inlined_call_operand.hbm [shape: bf16[2,8,768], index: 1, kind: input, shape index: {}]   ;;  %s5102_s2 = inlined_call_operand.hbm [shape: bf16[768,768], index: 2, kind: input, shape index: {}]   ;;  %s5103_s3 = inlined_call_operand.hbm [shape: f32[1,512], index: 3, kind: input, shape index: {}]   ;;  %s5104_s4 = inlined_call_operand.hbm [shape: f32[1,256], index: 4, kind: input, shape index: {}]   ;;  %s5105_s5 = inlined_call_operand.hbm [shape: f32[1,256], index: 5, kind: input, shape index: {}]   ;;  %s5106_s6 = inlined_call_operand.vmem [shape: bf16[256,64], index: 6, kind: input, shape index: {}]   ;;  %s5107_s7 = inlined_call_operand.hbm [shape: f32[1,64], index: 7, kind: input, shape index: {}]   ;;  %s5108_s8 = inlined_call_operand.vmem [shape: f32[2,1], index: 8, kind: output, shape index: {}]  }
   0x1   :  { %14 = vsyncpa [#allocation6], 0 }
   0x2   :  { %15 = vsyncpa [#allocation9], 0 }
   0x3   :  { %16 = vsyncpa [#allocation12], 0  ;;  %s34_s29 = sshll.u32 %s5101_s1, 4  ;;  %s4710_s30 = smov [#allocation5]   ;;  %s35_s29 = int_to_ptr.hbm [resolvable:$true] %s34_s29 }
   0x4   :  { %s36_s9 = sshll.u32 %s4710_s30, 4  ;;  %s61_s12 = sshll.u32 %s5103_s3, 4  ;;  %s37_s9 = int_to_ptr.vmem [resolvable:$true] %s36_s9  ;;  %s62_s12 = int_to_ptr.hbm [resolvable:$true] %s61_s12 }
   0x5   :  { %s4711_s13 = smov 384   ;;  %s4712_s14 = smov 24  }
   0x6   :  { %42 = dma.hbm_to_vmem [thread:$0]  %s35_s29, 768, %s37_s9, [#allocation6], %s4711_s13, %s4711_s13, %s4712_s14  }
   0x7   :  { %s4713_s15 = smov [#allocation8]   ;;  %s83_s1 = sshll.u32 %s5105_s5, 4  ;;  %s84_s1 = int_to_ptr.hbm [resolvable:$true] %s83_s1 }
   0x8   :  { %s63_s16 = sshll.u32 %s4713_s15, 4  ;;  %s21_s3 = sshll.u32 %s5100_s0, 4  ;;  %s64_s16 = int_to_ptr.vmem [resolvable:$true] %s63_s16  ;;  %s22_s3 = int_to_ptr.hbm [resolvable:$true] %s21_s3 }
   0x9   :  { %66 = dma.hbm_to_vmem [thread:$0]  %s62_s12, 64, %s64_s16, [#allocation9]  }
   0xa   :  { %s4714_s21 = smov [#allocation11]   ;;  %s4715_s23 = smov [#allocation3]  }
   0xb   :  { %s85_s22 = sshll.u32 %s4714_s21, 4  ;;  %s23_s24 = sshll.u32 %s4715_s23, 4  ;;  %s86_s22 = int_to_ptr.vmem [resolvable:$true] %s85_s22  ;;  %s24_s24 = int_to_ptr.vmem [resolvable:$true] %s23_s24 }
   0xc   :  { %88 = dma.hbm_to_vmem [thread:$0]  %s84_s1, 32, %s86_s22, [#allocation12]  }
   0xd   :  { %s47_s27 = sshll.u32 %s5102_s2, 4  ;;  %s72_s0 = sshll.u32 %s5104_s4, 4  ;;  %s48_s27 = int_to_ptr.hbm [resolvable:$true] %s47_s27  ;;  %s73_s0 = int_to_ptr.hbm [resolvable:$true] %s72_s0 }
   0xe   :  { %29 = dma.hbm_to_vmem [thread:$0]  %s22_s3, 768, %s24_s24, [#allocation4], %s4711_s13, %s4711_s13, %s4712_s14  }
   0xf   :  { %s4716_s29 = smov [#allocation7]   ;;  %s4717_s9 = smov [#allocation10]  }
  0x10   :  { %s49_s30 = sshll.u32 %s4716_s29, 4  ;;  %s74_s2 = sshll.u32 %s4717_s9, 4  ;;  %s50_s30 = int_to_ptr.vmem [resolvable:$true] %s49_s30  ;;  %s75_s2 = int_to_ptr.vmem [resolvable:$true] %s74_s2 }
  0x11   :  { %55 = dma.hbm_to_vmem [thread:$0]  %s48_s27, 36864, %s50_s30, [#allocation6], %s4711_s13, %s4711_s13, %s4712_s14  }
  0x12   :  { %s96_s12 = sshll.u32 %s5107_s7, 4  ;;  %s4718_s15 = smov [#allocation13]   ;;  %s97_s12 = int_to_ptr.hbm [resolvable:$true] %s96_s12 }
  0x13   :  { %77 = dma.hbm_to_vmem [thread:$0]  %s73_s0, 32, %s75_s2, [#allocation9]  }
  0x14   :  { %s98_s16 = sshll.u32 %s4718_s15, 4  ;;  %s99_s16 = int_to_ptr.vmem [resolvable:$true] %s98_s16 }
  0x15   :  { %101 = dma.hbm_to_vmem [thread:$0]  %s97_s12, 16, %s99_s16, [#allocation12]  }
  0x16   :  { %4702 = dma.done.wait [#allocation4], 768  }
  0x17   :  { %4703 = vsyncadd [#allocation4], 4294966528 }
  0x18   :  { %4704 = dma.done.wait [#allocation6], 37632  }
  0x19   :  { %4705 = vsyncadd [#allocation6], 4294929664 }
  0x1a   :  { %4706 = dma.done.wait [#allocation9], 96  }
  0x1b   :  { %4707 = vsyncadd [#allocation9], 4294967200 }
  0x1c   :  { %4708 = dma.done.wait [#allocation12], 48  }
  0x1d   :  { %4709 = vsyncadd [#allocation12], 4294967248  ;;  %v4719_v0 = vmov 0.0   ;;  %v3145_v1 = vld [vmem:[#allocation7 + $0x150] sm:$0xf]  ;;  %vm248_vm0 = vcmask 1043456  }
  0x1e   :  { %134 = vst [vmem:[#allocation2 + $0x10] sm:$0xff] %v4719_v0  ;;  %v4240_v2 = vld [vmem:[#allocation7 + $0x164] sm:$0xf0]  ;;  %v3337_v3 = vld [vmem:[#allocation7 + $0x2d0] sm:$0xf]  ;;  %vm256_vm1 = vcmask 1041409  }
  0x1f   :  { %135 = vst [vmem:[#allocation2] sm:$0xff] %v4719_v0  ;;  %v3146_v4 = vor.u32 %v4240_v2, %v3145_v1  ;;  %v4288_v5 = vld [vmem:[#allocation7 + $0x2e4] sm:$0xf0]  ;;  %v3529_v6 = vld [vmem:[#allocation7 + $0x450] sm:$0xf]  ;;  %vm258_vm2 = vcmask 1045509  }
  0x20   :  { %136 = vst [vmem:[#allocation2 + $0x8] sm:$0xff] %v4719_v0  ;;  %v4336_v7 = vld [vmem:[#allocation7 + $0x464] sm:$0xf0]  ;;  %v3338_v8 = vor.u32 %v4288_v5, %v3337_v3  ;;  %v3721_v10 = vld [vmem:[#allocation7 + $0x5d0] sm:$0xf]  ;;  %vm394_vm3 = vcmask 1043459  }
  0x21   :  { %v3530_v9 = vor.u32 %v4336_v7, %v3529_v6  ;;  %v4384_v11 = vld [vmem:[#allocation7 + $0x5e4] sm:$0xf0]  ;;  %v3121_v12 = vld [vmem:[#allocation7 + $0x120] sm:$0xf]  ;;  %2178 = vmatpush.bf16.msra.mxu0 %v3146_v4  ;;  %v4234_v14 = vld [vmem:[#allocation7 + $0x134] sm:$0xf0] }
  0x22   :  { %v3722_v13 = vor.u32 %v4384_v11, %v3721_v10  ;;  %v3313_v15 = vld [vmem:[#allocation7 + $0x2a0] sm:$0xf]  ;;  %v4282_v16 = vld [vmem:[#allocation7 + $0x2b4] sm:$0xf0]  ;;  %2191 = vmatpush.bf16.msra.mxu1 %v3338_v8  ;;  %v3122_v17 = vor.u32 %v4234_v14, %v3121_v12  ;;  %v3097_v24 = vld [vmem:[#allocation7 + $0xf0] sm:$0xf] }
  0x23   :  { %2204 = vmatpush.bf16.msra.mxu2 %v3530_v9  ;;  %v3314_v18 = vor.u32 %v4282_v16, %v3313_v15  ;;  %v3505_v19 = vld [vmem:[#allocation7 + $0x420] sm:$0xf]  ;;  %v4330_v20 = vld [vmem:[#allocation7 + $0x434] sm:$0xf0]  ;;  %v4228_v25 = vld [vmem:[#allocation7 + $0x104] sm:$0xf0] }
  0x24   :  { %v3697_v21 = vld [vmem:[#allocation7 + $0x5a0] sm:$0xf]  ;;  %2217 = vmatpush.bf16.msra.mxu3 %v3722_v13  ;;  %v3506_v22 = vor.u32 %v4330_v20, %v3505_v19  ;;  %v4378_v23 = vld [vmem:[#allocation7 + $0x5b4] sm:$0xf0]  ;;  %v3289_v27 = vld [vmem:[#allocation7 + $0x270] sm:$0xf]  ;;  %v3098_v30 = vor.u32 %v4228_v25, %v3097_v24 }
  0x25   :  { %v3698_v26 = vor.u32 %v4378_v23, %v3697_v21  ;;  %v4276_v28 = vld [vmem:[#allocation7 + $0x284] sm:$0xf0]  ;;  %v3481_v29 = vld [vmem:[#allocation7 + $0x3f0] sm:$0xf]  ;;  %2179 = vmatpush.bf16.msra.mxu0 %v3122_v17  ;;  %v3073_v36 = vld [vmem:[#allocation7 + $0xc0] sm:$0xf] }
  0x26   :  { %v4324_v31 = vld [vmem:[#allocation7 + $0x404] sm:$0xf0]  ;;  %v3673_v32 = vld [vmem:[#allocation7 + $0x570] sm:$0xf]  ;;  %2192 = vmatpush.bf16.msra.mxu1 %v3314_v18  ;;  %v3290_v34 = vor.u32 %v4276_v28, %v3289_v27  ;;  %v4222_v37 = vld [vmem:[#allocation7 + $0xd4] sm:$0xf0] }
  0x27   :  { %v4372_v33 = vld [vmem:[#allocation7 + $0x584] sm:$0xf0]  ;;  %2205 = vmatpush.bf16.msra.mxu2 %v3506_v22  ;;  %v3482_v35 = vor.u32 %v4324_v31, %v3481_v29  ;;  %v3265_v38 = vld [vmem:[#allocation7 + $0x240] sm:$0xf]  ;;  %v4270_v40 = vld [vmem:[#allocation7 + $0x254] sm:$0xf0]  ;;  %v3074_v45 = vor.u32 %v4222_v37, %v3073_v36 }
  0x28   :  { %2218 = vmatpush.bf16.msra.mxu3 %v3698_v26  ;;  %v3674_v39 = vor.u32 %v4372_v33, %v3673_v32  ;;  %v3457_v41 = vld [vmem:[#allocation7 + $0x3c0] sm:$0xf]  ;;  %v4318_v42 = vld [vmem:[#allocation7 + $0x3d4] sm:$0xf0]  ;;  %v3266_v46 = vor.u32 %v4270_v40, %v3265_v38  ;;  %v3049_v48 = vld [vmem:[#allocation7 + $0x90] sm:$0xf] }
  0x29   :  { %v3649_v43 = vld [vmem:[#allocation7 + $0x540] sm:$0xf]  ;;  %v4366_v44 = vld [vmem:[#allocation7 + $0x554] sm:$0xf0]  ;;  %2180 = vmatpush.bf16.msra.mxu0 %v3098_v30  ;;  %v3458_v47 = vor.u32 %v4318_v42, %v3457_v41  ;;  %v4216_v49 = vld [vmem:[#allocation7 + $0xa4] sm:$0xf0] }
  0x2a   :  { %2193 = vmatpush.bf16.msra.mxu1 %v3290_v34  ;;  %v3241_v50 = vld [vmem:[#allocation7 + $0x210] sm:$0xf]  ;;  %v3650_v51 = vor.u32 %v4366_v44, %v3649_v43  ;;  %v4264_v52 = vld [vmem:[#allocation7 + $0x224] sm:$0xf0]  ;;  %v3050_v57 = vor.u32 %v4216_v49, %v3049_v48  ;;  %v3025_v60 = vld [vmem:[#allocation7 + $0x60] sm:$0xf] }
  0x2b   :  { %2206 = vmatpush.bf16.msra.mxu2 %v3482_v35  ;;  %v3433_v53 = vld [vmem:[#allocation7 + $0x390] sm:$0xf]  ;;  %v4312_v54 = vld [vmem:[#allocation7 + $0x3a4] sm:$0xf0]  ;;  %v3242_v58 = vor.u32 %v4264_v52, %v3241_v50  ;;  %v4210_v61 = vld [vmem:[#allocation7 + $0x74] sm:$0xf0] }
  0x2c   :  { %2219 = vmatpush.bf16.msra.mxu3 %v3674_v39  ;;  %v3625_v55 = vld [vmem:[#allocation7 + $0x510] sm:$0xf]  ;;  %v4360_v56 = vld [vmem:[#allocation7 + $0x524] sm:$0xf0]  ;;  %v3434_v59 = vor.u32 %v4312_v54, %v3433_v53  ;;  %v3217_v62 = vld [vmem:[#allocation7 + $0x1e0] sm:$0xf]  ;;  %v3026_v5 = vor.u32 %v4210_v61, %v3025_v60 }
  0x2d   :  { %2181 = vmatpush.bf16.msra.mxu0 %v3074_v45  ;;  %v3626_v63 = vor.u32 %v4360_v56, %v3625_v55  ;;  %v4258_v0 = vld [vmem:[#allocation7 + $0x1f4] sm:$0xf0]  ;;  %v3409_v1 = vld [vmem:[#allocation7 + $0x360] sm:$0xf]  ;;  %v3001_v6 = vld [vmem:[#allocation7 + $0x30] sm:$0xf] }
  0x2e   :  { %2194 = vmatpush.bf16.msra.mxu1 %v3266_v46  ;;  %v4306_v2 = vld [vmem:[#allocation7 + $0x374] sm:$0xf0]  ;;  %v3601_v3 = vld [vmem:[#allocation7 + $0x4e0] sm:$0xf]  ;;  %v3218_v7 = vor.u32 %v4258_v0, %v3217_v62  ;;  %v4204_v9 = vld [vmem:[#allocation7 + $0x44] sm:$0xf0] }
  0x2f   :  { %2207 = vmatpush.bf16.msra.mxu2 %v3458_v47  ;;  %v4354_v4 = vld [vmem:[#allocation7 + $0x4f4] sm:$0xf0]  ;;  %v3410_v8 = vor.u32 %v4306_v2, %v3409_v1  ;;  %v3193_v10 = vld [vmem:[#allocation7 + $0x1b0] sm:$0xf]  ;;  %v4252_v11 = vld [vmem:[#allocation7 + $0x1c4] sm:$0xf0]  ;;  %v3002_v19 = vor.u32 %v4204_v9, %v3001_v6 }
  0x30   :  { %2220 = vmatpush.bf16.msra.mxu3 %v3650_v51  ;;  %v3602_v12 = vor.u32 %v4354_v4, %v3601_v3  ;;  %v3385_v13 = vld [vmem:[#allocation7 + $0x330] sm:$0xf]  ;;  %v4300_v14 = vld [vmem:[#allocation7 + $0x344] sm:$0xf0]  ;;  %v2977_v17 = vld [vmem:[#allocation7] sm:$0xf]  ;;  %v3194_v26 = vor.u32 %v4252_v11, %v3193_v10 }
  0x31   :  { %2182 = vmatpush.bf16.msra.mxu0 %v3050_v57  ;;  %v3577_v15 = vld [vmem:[#allocation7 + $0x4b0] sm:$0xf]  ;;  %v4348_v16 = vld [vmem:[#allocation7 + $0x4c4] sm:$0xf0]  ;;  %v4198_v18 = vld [vmem:[#allocation7 + $0x14] sm:$0xf0]  ;;  %v3386_v27 = vor.u32 %v4300_v14, %v3385_v13 }
  0x32   :  { %2195 = vmatpush.bf16.msra.mxu1 %v3242_v58  ;;  %v4795_v20 = vld [vmem:[#allocation7 + $0x180] sm:$0xf]  ;;  %v4797_v21 = vld [vmem:[#allocation7 + $0x194] sm:$0xf0]  ;;  %v4807_v28 = vld [vmem:[#allocation7 + $0x750] sm:$0xf]  ;;  %v3578_v36 = vor.u32 %v4348_v16, %v3577_v15  ;;  %v2978_v46 = vor.u32 %v4198_v18, %v2977_v17 }
  0x33   :  { %2208 = vmatpush.bf16.msra.mxu2 %v3434_v59  ;;  %v4799_v22 = vld [vmem:[#allocation7 + $0x300] sm:$0xf]  ;;  %v4801_v23 = vld [vmem:[#allocation7 + $0x314] sm:$0xf0]  ;;  %v4432_v29 = vld [vmem:[#allocation7 + $0x764] sm:$0xf0]  ;;  %v3170_v50 = vor.u32 %v4797_v21, %v4795_v20 }
  0x34   :  { %2221 = vmatpush.bf16.msra.mxu3 %v3626_v63  ;;  %v4803_v24 = vld [vmem:[#allocation7 + $0x480] sm:$0xf]  ;;  %v4805_v25 = vld [vmem:[#allocation7 + $0x494] sm:$0xf0]  ;;  %v4809_v30 = vld [vmem:[#allocation7 + $0x8d0] sm:$0xf]  ;;  %v3362_v51 = vor.u32 %v4801_v23, %v4799_v22  ;;  %v3914_v56 = vor.u32 %v4432_v29, %v4807_v28 }
  0x35   :  { %2183 = vmatpush.bf16.msra.mxu0 %v3026_v5  ;;  %v4811_v31 = vld [vmem:[#allocation7 + $0x8e4] sm:$0xf0]  ;;  %v4813_v32 = vld [vmem:[#allocation7 + $0x154] sm:$0xf]  ;;  %v4815_v33 = vld [vmem:[#allocation7 + $0x168] sm:$0xf0]  ;;  %v3554_v52 = vor.u32 %v4805_v25, %v4803_v24 }
  0x36   :  { %2196 = vmatpush.bf16.msra.mxu1 %v3218_v7  ;;  %v4817_v34 = vld [vmem:[#allocation7 + $0x2d4] sm:$0xf]  ;;  %v4819_v35 = vld [vmem:[#allocation7 + $0x2e8] sm:$0xf0]  ;;  %v4821_v37 = vld [vmem:[#allocation7 + $0x720] sm:$0xf]  ;;  %v4106_v57 = vor.u32 %v4811_v31, %v4809_v30  ;;  %v3150_v58 = vor.u32 %v4813_v32, %v4815_v33 }
  0x37   :  { %2209 = vmatpush.bf16.msra.mxu2 %v3410_v8  ;;  %v4823_v38 = vld [vmem:[#allocation7 + $0x734] sm:$0xf0]  ;;  %v4825_v39 = vld [vmem:[#allocation7 + $0x8a0] sm:$0xf]  ;;  %v4829_v41 = vld [vmem:[#allocation7 + $0x124] sm:$0xf]  ;;  %v3342_v59 = vor.u32 %v4817_v34, %v4819_v35 }
  0x38   :  { %2222 = vmatpush.bf16.msra.mxu3 %v3602_v12  ;;  %v4827_v40 = vld [vmem:[#allocation7 + $0x8b4] sm:$0xf0]  ;;  %v4831_v42 = vld [vmem:[#allocation7 + $0x138] sm:$0xf0]  ;;  %v4833_v43 = vld [vmem:[#allocation7 + $0x2a4] sm:$0xf]  ;;  %v3890_v63 = vor.u32 %v4823_v38, %v4821_v37 }
  0x39   :  { %v4835_v44 = vld [vmem:[#allocation7 + $0x2b8] sm:$0xf0]  ;;  %v4837_v45 = vld [vmem:[#allocation7 + $0x6f0] sm:$0xf]  ;;  %2184 = vmatpush.bf16.msra.mxu0 %v3002_v19  ;;  %v4839_v47 = vld [vmem:[#allocation7 + $0x704] sm:$0xf0]  ;;  %v4082_v0 = vor.u32 %v4827_v40, %v4825_v39  ;;  %v3126_v1 = vor.u32 %v4829_v41, %v4831_v42 }
  0x3a   :  { %v4841_v48 = vld [vmem:[#allocation7 + $0x870] sm:$0xf]  ;;  %v4843_v49 = vld [vmem:[#allocation7 + $0x884] sm:$0xf0]  ;;  %2197 = vmatpush.bf16.msra.mxu1 %v3194_v26  ;;  %v4851_v53 = vld [vmem:[#allocation7 + $0xf4] sm:$0xf]  ;;  %v3318_v2 = vor.u32 %v4833_v43, %v4835_v44  ;;  %v3866_v6 = vor.u32 %v4839_v47, %v4837_v45 }
  0x3b   :  { %2210 = vmatpush.bf16.msra.mxu2 %v3386_v27  ;;  %v4853_v54 = vld [vmem:[#allocation7 + $0x108] sm:$0xf0]  ;;  %v4855_v55 = vld [vmem:[#allocation7 + $0x274] sm:$0xf]  ;;  %v4866_v61 = vld [vmem:[#allocation7 + $0x6c0] sm:$0xf]  ;;  %v4058_v7 = vor.u32 %v4843_v49, %v4841_v48 }
  0x3c   :  { %2223 = vmatpush.bf16.msra.mxu3 %v3578_v36  ;;  %v4864_v60 = vld [vmem:[#allocation7 + $0x288] sm:$0xf0]  ;;  %v4868_v62 = vld [vmem:[#allocation7 + $0x6d4] sm:$0xf0]  ;;  %v4878_v3 = vld [vmem:[#allocation7 + $0x840] sm:$0xf]  ;;  %v3102_v8 = vor.u32 %v4851_v53, %v4853_v54 }
  0x3d   :  { %v4880_v4 = vld [vmem:[#allocation7 + $0x854] sm:$0xf0]  ;;  %v4882_v5 = vld [vmem:[#allocation7 + $0xc4] sm:$0xf]  ;;  %2185 = vmatpush.bf16.msra.mxu0 %v2978_v46  ;;  %v3294_v9 = vor.u32 %v4855_v55, %v4864_v60  ;;  %v4892_v10 = vld [vmem:[#allocation7 + $0xd8] sm:$0xf0]  ;;  %v3842_v13 = vor.u32 %v4868_v62, %v4866_v61 }
  0x3e   :  { %v4894_v11 = vld [vmem:[#allocation7 + $0x244] sm:$0xf]  ;;  %v4896_v12 = vld [vmem:[#allocation7 + $0x258] sm:$0xf0]  ;;  %2198 = vmatpush.bf16.msra.mxu1 %v3170_v50  ;;  %v4034_v14 = vor.u32 %v4880_v4, %v4878_v3  ;;  %v3078_v15 = vor.u32 %v4882_v5, %v4892_v10  ;;  %v278_v22 = vld [vmem:[#allocation5] sm:$0xff]  ;;  %vm396_vm4 = vcmask 1047559  }
  0x3f   :  { %2211 = vmatpush.bf16.msra.mxu2 %v3362_v51  ;;  %v140_v16 = vld [vmem:[#allocation3] sm:$0xff]  ;;  %v143_v17 = vld [vmem:[#allocation3 + $0x18] sm:$0xff]  ;;  %v281_v23 = vld [vmem:[#allocation5 + $0x18] sm:$0xff]  ;;  %v3270_v24 = vor.u32 %v4894_v11, %v4896_v12  ;;  %v284_v25 = vunpack.c.l.bf16 %v278_v22  ;;  %v285_v26 = vunpack.c.h.bf16 %v278_v22 }
  0x40   :  { %2224 = vmatpush.bf16.msra.mxu3 %v3554_v52  ;;  %v146_v18 = vunpack.c.l.bf16 %v140_v16  ;;  %v147_v19 = vunpack.c.h.bf16 %v140_v16  ;;  %v152_v20 = vunpack.c.l.bf16 %v143_v17  ;;  %v153_v21 = vunpack.c.h.bf16 %v143_v17  ;;  %v3817_v22 = vld [vmem:[#allocation7 + $0x690] sm:$0xf]  ;;  %v4456_v62 = vld [vmem:[#allocation7 + $0x824] sm:$0xf0]  ;;  %v3051_v3 = vld [vmem:[#allocation7 + $0xa8] sm:$0xf0] }
  0x41   :  { %2230 = vmatpush.bf16.msrb.mxu0 %v3914_v56  ;;  %v290_v27 = vunpack.c.l.bf16 %v281_v23  ;;  %v291_v32 = vunpack.c.h.bf16 %v281_v23  ;;  %v296_v33 = vrot.slane %v284_v25, 4  ;;  %v302_v34 = vrot.slane %v285_v26, 4  ;;  %v4408_v23 = vld [vmem:[#allocation7 + $0x6a4] sm:$0xf0]  ;;  %v4009_v55 = vld [vmem:[#allocation7 + $0x810] sm:$0xf] }
  0x42   :  { %2243 = vmatpush.bf16.msrb.mxu1 %v4106_v57  ;;  %v158_v28 = vrot.slane %v146_v18, 4  ;;  %v164_v29 = vrot.slane %v147_v19, 4  ;;  %v194_v30 = vrot.slane %v152_v20, 4  ;;  %v200_v31 = vrot.slane %v153_v21, 4  ;;  %v3793_v12 = vld [vmem:[#allocation7 + $0x660] sm:$0xf] }
  0x43   :  { %2256 = vmatpush.bf16.msrb.mxu2 %v3150_v58  ;;  %v332_v35 = vrot.slane %v290_v27, 4  ;;  %v297_v40 = vadd.f32 %v296_v33, %v284_v25  ;;  %v303_v41 = vadd.f32 %v302_v34, %v285_v26  ;;  %v338_v43 = vrot.slane %v291_v32, 4  ;;  %v4918_v26 = vld [vmem:[#allocation3 + $0x8] sm:$0xff] }
  0x44   :  { %2269 = vmatpush.bf16.msrb.mxu3 %v3342_v59  ;;  %v159_v36 = vadd.f32 %v158_v28, %v146_v18  ;;  %v165_v37 = vadd.f32 %v164_v29, %v147_v19  ;;  %v195_v38 = vadd.f32 %v194_v30, %v152_v20  ;;  %v201_v39 = vadd.f32 %v200_v31, %v153_v21  ;;  %v3243_v29 = vld [vmem:[#allocation7 + $0x228] sm:$0xf0]  ;;  %v144_v30 = vld [vmem:[#allocation3 + $0x20] sm:$0xff]  ;;  %v137_v31 = vld [vmem:[#allocation2 + $0x10] sm:$0x33] }
  0x45   :  { %2231 = vmatpush.bf16.msrb.mxu0 %v3890_v63  ;;  %v333_v42 = vadd.f32 %v332_v35, %v290_v27  ;;  %v298_v48 = vrot.slane %v297_v40, 2  ;;  %v304_v49 = vrot.slane %v303_v41, 2  ;;  %v339_v51 = vadd.f32 %v338_v43, %v291_v32  ;;  %v3985_v35 = vld [vmem:[#allocation7 + $0x7e0] sm:$0xf] }
  0x46   :  { %2244 = vmatpush.bf16.msrb.mxu1 %v4082_v0  ;;  %v160_v44 = vrot.slane %v159_v36, 2  ;;  %v166_v45 = vrot.slane %v165_v37, 2  ;;  %v196_v46 = vrot.slane %v195_v38, 2  ;;  %v202_v47 = vrot.slane %v201_v39, 2 }
  0x47   :  { %2257 = vmatpush.bf16.msrb.mxu2 %v3126_v1  ;;  %v334_v50 = vrot.slane %v333_v42, 2  ;;  %v299_v57 = vadd.f32 %v298_v48, %v297_v40  ;;  %v305_v58 = vadd.f32 %v304_v49, %v303_v41  ;;  %v340_v63 = vrot.slane %v339_v51, 2  ;;  %v4450_v40 = vld [vmem:[#allocation7 + $0x7f4] sm:$0xf0]  ;;  %v4207_v41 = vld [vmem:[#allocation7 + $0x64] sm:$0xf] }
  0x48   :  { %2270 = vmatpush.bf16.msrb.mxu3 %v3318_v2  ;;  %v161_v52 = vadd.f32 %v160_v44, %v159_v36  ;;  %v167_v53 = vadd.f32 %v166_v45, %v165_v37  ;;  %v197_v54 = vadd.f32 %v196_v46, %v195_v38  ;;  %v203_v56 = vadd.f32 %v202_v47, %v201_v39  ;;  %v3027_v44 = vld [vmem:[#allocation7 + $0x78] sm:$0xf0]  ;;  %v4255_v45 = vld [vmem:[#allocation7 + $0x1e4] sm:$0xf] }
  0x49   :  { %2232 = vmatpush.bf16.msrb.mxu0 %v3866_v6  ;;  %v335_v59 = vadd.f32 %v334_v50, %v333_v42  ;;  %v300_v16 = vrot.slane %v299_v57, 1  ;;  %v306_v17 = vrot.slane %v305_v58, 1  ;;  %v341_v19 = vadd.f32 %v340_v63, %v339_v51  ;;  %v3219_v51 = vld [vmem:[#allocation7 + $0x1f8] sm:$0xf0] }
  0x4a   :  { %2245 = vmatpush.bf16.msrb.mxu1 %v4058_v7  ;;  %v162_v0 = vrot.slane %v161_v52, 1  ;;  %v168_v1 = vrot.slane %v167_v53, 1  ;;  %v198_v2 = vrot.slane %v197_v54, 1  ;;  %v204_v6 = vrot.slane %v203_v56, 1  ;;  %v275_v63 = vld [vmem:[#allocation2 + $0x10] sm:$0xcc] }
  0x4b   :  { %2258 = vmatpush.bf16.msrb.mxu2 %v3102_v8  ;;  %v336_v18 = vrot.slane %v335_v59, 1  ;;  %v301_v60 = vadd.f32 %v300_v16, %v299_v57  ;;  %v342_v61 = vrot.slane %v341_v19, 1  ;;  %v3818_v10 = vor.u32 %v4408_v23, %v3817_v22 }
  0x4c   :  { %2271 = vmatpush.bf16.msrb.mxu3 %v3294_v9  ;;  %v163_v7 = vadd.f32 %v162_v0, %v161_v52  ;;  %v169_v8 = vadd.f32 %v168_v1, %v167_v53  ;;  %v199_v20 = vadd.f32 %v198_v2, %v197_v54  ;;  %v205_v21 = vadd.f32 %v204_v6, %v203_v56  ;;  %v279_v53 = vld [vmem:[#allocation5 + $0x8] sm:$0xff]  ;;  %v282_v6 = vld [vmem:[#allocation5 + $0x20] sm:$0xff] }
  0x4d   :  { %2233 = vmatpush.bf16.msrb.mxu0 %v3842_v13  ;;  %v307_v9 = vadd.f32 %v306_v17, %v305_v58  ;;  %v337_v25 = vadd.f32 %v336_v18, %v335_v59  ;;  %v4213_v13 = vld [vmem:[#allocation7 + $0x94] sm:$0xf]  ;;  %v343_v4 = vadd.f32 %v342_v61, %v341_v19  ;;  %v3986_v43 = vor.u32 %v4450_v40, %v3985_v35 }
  0x4e   :  { %2246 = vmatpush.bf16.msrb.mxu1 %v4034_v14  ;;  %v242_v27 = vrot.slane %v169_v8, 4  ;;  %v245_v28 = vrot.slane %v205_v21, 4  ;;  %v4010_v14 = vor.u32 %v4456_v62, %v4009_v55  ;;  %v3054_v34 = vor.u32 %v4213_v13, %v3051_v3 }
  0x4f   :  { %2259 = vmatpush.bf16.msrb.mxu2 %v3078_v15  ;;  %v380_v5 = vrot.slane %v307_v9, 4  ;;  %v4261_v15 = vld [vmem:[#allocation7 + $0x214] sm:$0xf]  ;;  %v383_v37 = vrot.slane %v343_v4, 4  ;;  %v148_v46 = vunpack.c.l.bf16 %v4918_v26  ;;  %v149_v47 = vunpack.c.h.bf16 %v4918_v26 }
  0x50   :  { %2272 = vmatpush.bf16.msrb.mxu3 %v3270_v24  ;;  %v249_v32 = vsel %vm248_vm0, %v163_v7, %v242_v27  ;;  %v252_v33 = vsel %vm248_vm0, %v199_v20, %v245_v28  ;;  %v3246_v11 = vor.u32 %v4261_v15, %v3243_v29  ;;  %v4402_v24 = vld [vmem:[#allocation7 + $0x674] sm:$0xf0]  ;;  %v3030_v50 = vor.u32 %v4207_v41, %v3027_v44 }
  0x51   :  { %v255_v36 = vrot.slane %v252_v33, 7  ;;  %v386_v38 = vsel %vm248_vm0, %v301_v60, %v380_v5  ;;  %2234 = vmatpush.bf16.msrb.mxu0 %v3818_v10  ;;  %v3794_v39 = vor.u32 %v4402_v24, %v3793_v12  ;;  %v389_v49 = vsel %vm248_vm0, %v337_v25, %v383_v37 }
  0x52   :  { %2247 = vmatpush.bf16.msrb.mxu1 %v4010_v14  ;;  %v392_v42 = vrot.slane %v386_v38, 6  ;;  %v154_v52 = vunpack.c.l.bf16 %v144_v30  ;;  %v393_v56 = vrot.slane %v389_v49, 5  ;;  %v3222_v57 = vor.u32 %v4255_v45, %v3219_v51 }
  0x53   :  { %2260 = vmatpush.bf16.msrb.mxu2 %v3054_v34  ;;  %v257_v48 = vsel %vm256_vm1, %v255_v36, %v249_v32  ;;  %v155_v58 = vunpack.c.h.bf16 %v144_v30  ;;  %v170_v0 = vrot.slane %v148_v46, 4  ;;  %v176_v1 = vrot.slane %v149_v47, 4 }
  0x54   :  { %2273 = vmatpush.bf16.msrb.mxu3 %v3246_v11  ;;  %v259_v54 = vsel %vm258_vm2, %v255_v36, %v257_v48  ;;  %v206_v2 = vrot.slane %v154_v52, 4  ;;  %v395_v16 = vsel %vm394_vm3, %v393_v56, %v392_v42  ;;  %v286_v18 = vunpack.c.l.bf16 %v279_v53  ;;  %v4933_v36 = vld [vmem:[#allocation3 + $0x10] sm:$0xff] }
  0x55   :  { %v269_v59 = vadd.f32 %v259_v54, %v137_v31  ;;  %2235 = vmatpush.bf16.msrb.mxu0 %v3794_v39  ;;  %v212_v17 = vrot.slane %v155_v58, 4  ;;  %v287_v19 = vunpack.c.h.bf16 %v279_v53  ;;  %v397_v7 = vsel %vm396_vm4, %v393_v56, %v395_v16 }
  0x56   :  { %2248 = vmatpush.bf16.msrb.mxu1 %v3986_v43  ;;  %v171_v8 = vadd.f32 %v170_v0, %v148_v46  ;;  %v177_v20 = vadd.f32 %v176_v1, %v149_v47  ;;  %v207_v21 = vadd.f32 %v206_v2, %v154_v52  ;;  %v409_v22 = vadd.f32 %v397_v7, %v275_v63  ;;  %v3769_v1 = vld [vmem:[#allocation7 + $0x630] sm:$0xf]  ;;  %v4396_v2 = vld [vmem:[#allocation7 + $0x644] sm:$0xf0] }
  0x57   :  { %2261 = vmatpush.bf16.msrb.mxu2 %v3030_v50  ;;  %272 = vst [vmem:[#allocation2 + $0x10] sm:$0x33] %v269_v59  ;;  %v213_v23 = vadd.f32 %v212_v17, %v155_v58  ;;  %v292_v55 = vunpack.c.l.bf16 %v282_v6  ;;  %v293_v60 = vunpack.c.h.bf16 %v282_v6  ;;  %v308_v62 = vrot.slane %v286_v18, 4 }
  0x58   :  { %2274 = vmatpush.bf16.msrb.mxu3 %v3222_v57  ;;  %v172_v9 = vrot.slane %v171_v8, 2  ;;  %v178_v25 = vrot.slane %v177_v20, 2  ;;  %v208_v61 = vrot.slane %v207_v21, 2  ;;  %412 = vst [vmem:[#allocation2 + $0x10] sm:$0xcc] %v409_v22  ;;  %v314_v26 = vrot.slane %v287_v19, 4 }
  0x59   :  { %v214_v13 = vrot.slane %v213_v23, 2  ;;  %v344_v27 = vrot.slane %v292_v55, 4  ;;  %v350_v28 = vrot.slane %v293_v60, 4  ;;  %v309_v10 = vadd.f32 %v308_v62, %v286_v18  ;;  %v138_v57 = vld [vmem:[#allocation2] sm:$0x33] }
  0x5a   :  { %v173_v3 = vadd.f32 %v172_v9, %v171_v8  ;;  %v179_v4 = vadd.f32 %v178_v25, %v177_v20  ;;  %v209_v5 = vadd.f32 %v208_v61, %v207_v21  ;;  %v315_v15 = vadd.f32 %v314_v26, %v287_v19  ;;  %v3961_v18 = vld [vmem:[#allocation7 + $0x7b0] sm:$0xf]  ;;  %v4444_v19 = vld [vmem:[#allocation7 + $0x7c4] sm:$0xf0]  ;;  %v4201_v21 = vld [vmem:[#allocation7 + $0x34] sm:$0xf] }
  0x5b   :  { %v215_v14 = vadd.f32 %v214_v13, %v213_v23  ;;  %v345_v29 = vadd.f32 %v344_v27, %v292_v55  ;;  %v351_v30 = vadd.f32 %v350_v28, %v293_v60  ;;  %v310_v34 = vrot.slane %v309_v10, 2  ;;  %v3003_v22 = vld [vmem:[#allocation7 + $0x48] sm:$0xf0]  ;;  %v4249_v61 = vld [vmem:[#allocation7 + $0x1b4] sm:$0xf]  ;;  %v4944_v26 = vld [vmem:[#allocation5 + $0x10] sm:$0xff] }
  0x5c   :  { %v174_v31 = vrot.slane %v173_v3, 1  ;;  %v180_v32 = vrot.slane %v179_v4, 1  ;;  %v210_v33 = vrot.slane %v209_v5, 1  ;;  %v316_v12 = vrot.slane %v315_v15, 2  ;;  %v4939_v23 = vld [vmem:[#allocation3 + $0x28] sm:$0xff] }
  0x5d   :  { %v216_v11 = vrot.slane %v215_v14, 1  ;;  %v346_v24 = vrot.slane %v345_v29, 2  ;;  %v352_v35 = vrot.slane %v351_v30, 2  ;;  %v311_v40 = vadd.f32 %v310_v34, %v309_v10  ;;  %v3195_v62 = vld [vmem:[#allocation7 + $0x1c8] sm:$0xf0]  ;;  %v283_v34 = vld [vmem:[#allocation5 + $0x28] sm:$0xff] }
  0x5e   :  { %v175_v37 = vadd.f32 %v174_v31, %v173_v3  ;;  %v181_v38 = vadd.f32 %v180_v32, %v179_v4  ;;  %v211_v39 = vadd.f32 %v210_v33, %v209_v5  ;;  %v317_v42 = vadd.f32 %v316_v12, %v315_v15  ;;  %v3745_v4 = vld [vmem:[#allocation7 + $0x600] sm:$0xf]  ;;  %v4390_v5 = vld [vmem:[#allocation7 + $0x614] sm:$0xf0]  ;;  %v276_v15 = vld [vmem:[#allocation2] sm:$0xcc] }
  0x5f   :  { %v217_v41 = vadd.f32 %v216_v11, %v215_v14  ;;  %v347_v43 = vadd.f32 %v346_v24, %v345_v29  ;;  %v353_v44 = vadd.f32 %v352_v35, %v351_v30  ;;  %v418_v45 = vld [vmem:[#allocation2 + $0x10] sm:$0xff]  ;;  %v312_v47 = vrot.slane %v311_v40, 1  ;;  %v3937_v10 = vld [vmem:[#allocation7 + $0x780] sm:$0xf]  ;;  %v4195_v33 = vld [vmem:[#allocation7 + $0x4] sm:$0xf] }
  0x60   :  { %v243_v46 = vrot.slane %v181_v38, 4  ;;  %v150_v48 = vunpack.c.l.bf16 %v4933_v36  ;;  %v151_v49 = vunpack.c.h.bf16 %v4933_v36  ;;  %v421_v50 = vmul.f32 0.125, %v418_v45  ;;  %v4438_v32 = vld [vmem:[#allocation7 + $0x794] sm:$0xf0]  ;;  %v2979_v24 = vld [vmem:[#allocation7 + $0x18] sm:$0xf0] }
  0x61   :  { %v246_v51 = vrot.slane %v217_v41, 4  ;;  %v318_v52 = vrot.slane %v317_v42, 1  ;;  %v348_v53 = vrot.slane %v347_v43, 1  ;;  %v354_v56 = vrot.slane %v353_v44, 1  ;;  %v4243_v35 = vld [vmem:[#allocation7 + $0x184] sm:$0xf] }
  0x62   :  { %v250_v54 = vsel %vm248_vm0, %v175_v37, %v243_v46  ;;  %427 = vst [vmem:[#allocation1] ss:$2 sm:$0xff] %v421_v50  ;;  %v313_v59 = vadd.f32 %v312_v47, %v311_v40  ;;  %v3770_v17 = vor.u32 %v4396_v2, %v3769_v1  ;;  %v182_v7 = vrot.slane %v150_v48, 4  ;;  %v4333_v50 = vld [vmem:[#allocation7 + $0x454] sm:$0xf] }
  0x63   :  { %v253_v58 = vsel %vm248_vm0, %v211_v39, %v246_v51  ;;  %v319_v63 = vadd.f32 %v318_v52, %v317_v42  ;;  %v349_v0 = vadd.f32 %v348_v53, %v347_v43  ;;  %v355_v16 = vadd.f32 %v354_v56, %v353_v44  ;;  %v3531_v36 = vld [vmem:[#allocation7 + $0x468] sm:$0xf0] }
  0x64   :  { %v260_v6 = vrot.slane %v253_v58, 7  ;;  %v3962_v20 = vor.u32 %v4444_v19, %v3961_v18  ;;  %v188_v55 = vrot.slane %v151_v49, 4  ;;  %2236 = vmatpush.bf16.msrb.mxu0 %v3770_v17  ;;  %v3006_v25 = vor.u32 %v4201_v21, %v3003_v22 }
  0x65   :  { %v381_v8 = vrot.slane %v319_v63, 4  ;;  %v384_v9 = vrot.slane %v355_v16, 4  ;;  %v183_v13 = vadd.f32 %v182_v7, %v150_v48  ;;  %v3198_v3 = vor.u32 %v4249_v61, %v3195_v62  ;;  %v3171_v48 = vld [vmem:[#allocation7 + $0x198] sm:$0xf0] }
  0x66   :  { %v261_v60 = vsel %vm256_vm1, %v260_v6, %v250_v54  ;;  %2249 = vmatpush.bf16.msrb.mxu1 %v3962_v20  ;;  %2262 = vmatpush.bf16.msrb.mxu2 %v3006_v25  ;;  %v3746_v31 = vor.u32 %v4390_v5, %v3745_v4  ;;  %v3938_v12 = vor.u32 %v4438_v32, %v3937_v10  ;;  %v156_v37 = vunpack.c.l.bf16 %v4939_v23  ;;  %v3723_v54 = vld [vmem:[#allocation7 + $0x5e8] sm:$0xf0] }
  0x67   :  { %v262_v27 = vsel %vm258_vm2, %v260_v6, %v261_v60  ;;  %v387_v28 = vsel %vm248_vm0, %v313_v59, %v381_v8  ;;  %v390_v29 = vsel %vm248_vm0, %v349_v0, %v384_v9  ;;  %2275 = vmatpush.bf16.msrb.mxu3 %v3198_v3  ;;  %v184_v38 = vrot.slane %v183_v13, 2 }
  0x68   :  { %v270_v14 = vadd.f32 %v262_v27, %v138_v57  ;;  %v398_v30 = vrot.slane %v387_v28, 6  ;;  %v399_v11 = vrot.slane %v390_v29, 5  ;;  %2237 = vmatpush.bf16.msrb.mxu0 %v3746_v31  ;;  %v2982_v41 = vor.u32 %v4195_v33, %v2979_v24 }
  0x69   :  { %v432_v39 = vld.sshfl [vmem:[#allocation1] sm:$0xff pattern:$0x75316420]  ;;  %v433_v40 = vld.sshfl [vmem:[#allocation1 + $0x8] sm:$0xff pattern:$0x75316420]  ;;  %v157_v42 = vunpack.c.h.bf16 %v4939_v23  ;;  %v189_v43 = vadd.f32 %v188_v55, %v151_v49  ;;  %v288_v44 = vunpack.c.l.bf16 %v4944_v26  ;;  %v289_v51 = vunpack.c.h.bf16 %v4944_v26 }
  0x6a   :  { %v4954_v45 = vpack.c.bf16 %v432_v39, %v432_v39  ;;  %v4956_v46 = vpack.c.bf16 %v433_v40, %v433_v40  ;;  %273 = vst [vmem:[#allocation2] sm:$0x33] %v270_v14  ;;  %v400_v47 = vsel %vm394_vm3, %v399_v11, %v398_v30  ;;  %2250 = vmatpush.bf16.msrb.mxu1 %v3938_v12  ;;  %v4381_v49 = vld [vmem:[#allocation7 + $0x5d4] sm:$0xf]  ;;  %v294_v56 = vunpack.c.l.bf16 %v283_v34 }
  0x6b   :  { %v401_v52 = vsel %vm396_vm4, %v399_v11, %v400_v47  ;;  %2263 = vmatpush.bf16.msrb.mxu2 %v2982_v41  ;;  %v3174_v53 = vor.u32 %v4243_v35, %v3171_v48  ;;  %v3534_v58 = vor.u32 %v4333_v50, %v3531_v36  ;;  %v3726_v59 = vor.u32 %v4381_v49, %v3723_v54  ;;  %v4327_v41 = vld [vmem:[#allocation7 + $0x424] sm:$0xf]  ;;  %v3699_v50 = vld [vmem:[#allocation7 + $0x5b8] sm:$0xf0] }
  0x6c   :  { %2186 = vmatmul.bf16.vlgmr.msra.gmra.mxu0 %v4954_v45  ;;  %2199 = vmatmul.bf16.vlgmr.msra.gmra.mxu1 %v4956_v46  ;;  %v410_v57 = vadd.f32 %v401_v52, %v276_v15  ;;  %v295_v63 = vunpack.c.h.bf16 %v283_v34  ;;  %v190_v0 = vrot.slane %v189_v43, 2  ;;  %v218_v1 = vrot.slane %v156_v37, 4  ;;  %v4375_v48 = vld [vmem:[#allocation7 + $0x5a4] sm:$0xf]  ;;  %v3915_v52 = vld [vmem:[#allocation7 + $0x768] sm:$0xf0] }
  0x6d   :  { %2276 = vmatpush.bf16.msrb.mxu3 %v3174_v53  ;;  %2282 = vmatpush.bf16.msra.mxu0 %v3534_v58  ;;  %v224_v2 = vrot.slane %v157_v42, 4  ;;  %v320_v6 = vrot.slane %v288_v44, 4  ;;  %v326_v16 = vrot.slane %v289_v51, 4  ;;  %v185_v17 = vadd.f32 %v184_v38, %v183_v13  ;;  %v4477_v53 = vld [vmem:[#allocation7 + $0x8d4] sm:$0xf] }
  0x6e   :  { %413 = vst [vmem:[#allocation2] sm:$0xcc] %v410_v57  ;;  %2295 = vmatpush.bf16.msra.mxu1 %v3726_v59  ;;  %v191_v18 = vadd.f32 %v190_v0, %v189_v43  ;;  %v219_v19 = vadd.f32 %v218_v1, %v156_v37  ;;  %v356_v7 = vrot.slane %v294_v56, 4  ;;  %v362_v22 = vrot.slane %v295_v63, 4  ;;  %v139_v57 = vld [vmem:[#allocation2 + $0x8] sm:$0x33] }
  0x6f   :  { %v225_v8 = vadd.f32 %v224_v2, %v157_v42  ;;  %v321_v20 = vadd.f32 %v320_v6, %v288_v44  ;;  %v327_v21 = vadd.f32 %v326_v16, %v289_v51  ;;  %v186_v26 = vrot.slane %v185_v17, 1  ;;  %v3507_v42 = vld [vmem:[#allocation7 + $0x438] sm:$0xf0]  ;;  %v4429_v51 = vld [vmem:[#allocation7 + $0x754] sm:$0xf] }
  0x70   :  { %v192_v23 = vrot.slane %v191_v18, 1  ;;  %v220_v55 = vrot.slane %v219_v19, 2  ;;  %v357_v60 = vadd.f32 %v356_v7, %v294_v56  ;;  %v363_v62 = vadd.f32 %v362_v22, %v295_v63  ;;  %v4107_v56 = vld [vmem:[#allocation7 + $0x8e8] sm:$0xf0]  ;;  %v4321_v0 = vld [vmem:[#allocation7 + $0x3f4] sm:$0xf] }
  0x71   :  { %v226_v9 = vrot.slane %v225_v8, 2  ;;  %v322_v25 = vrot.slane %v321_v20, 2  ;;  %v328_v61 = vrot.slane %v327_v21, 2  ;;  %v187_v34 = vadd.f32 %v186_v26, %v185_v17  ;;  %v3483_v1 = vld [vmem:[#allocation7 + $0x408] sm:$0xf0] }
  0x72   :  { %v193_v27 = vadd.f32 %v192_v23, %v191_v18  ;;  %v221_v28 = vadd.f32 %v220_v55, %v219_v19  ;;  %v358_v3 = vrot.slane %v357_v60, 2  ;;  %v364_v10 = vrot.slane %v363_v62, 2  ;;  %v4423_v16 = vld [vmem:[#allocation7 + $0x724] sm:$0xf]  ;;  %v4369_v17 = vld [vmem:[#allocation7 + $0x574] sm:$0xf] }
  0x73   :  { %v227_v4 = vadd.f32 %v226_v9, %v225_v8  ;;  %v323_v13 = vadd.f32 %v322_v25, %v321_v20  ;;  %v329_v5 = vadd.f32 %v328_v61, %v327_v21  ;;  %v3510_v47 = vor.u32 %v4327_v41, %v3507_v42  ;;  %v3891_v7 = vld [vmem:[#allocation7 + $0x738] sm:$0xf0]  ;;  %v3675_v20 = vld [vmem:[#allocation7 + $0x588] sm:$0xf0]  ;;  %v4411_v42 = vld [vmem:[#allocation7 + $0x6c4] sm:$0xf] }
  0x74   :  { %v222_v15 = vrot.slane %v221_v28, 1  ;;  %v359_v29 = vadd.f32 %v358_v3, %v357_v60  ;;  %v244_v11 = vrot.slane %v193_v27, 4  ;;  %v365_v24 = vadd.f32 %v364_v10, %v363_v62  ;;  %v277_v60 = vld [vmem:[#allocation2 + $0x8] sm:$0xcc]  ;;  %v4083_v3 = vld [vmem:[#allocation7 + $0x8b8] sm:$0xf0] }
  0x75   :  { %v419_v14 = vld [vmem:[#allocation2] sm:$0xff]  ;;  %v228_v31 = vrot.slane %v227_v4, 1  ;;  %v324_v32 = vrot.slane %v323_v13, 1  ;;  %v330_v33 = vrot.slane %v329_v5, 1  ;;  %v3702_v54 = vor.u32 %v4375_v48, %v3699_v50  ;;  %2283 = vmatpush.bf16.msra.mxu0 %v3510_v47  ;;  %v4363_v10 = vld [vmem:[#allocation7 + $0x544] sm:$0xf] }
  0x76   :  { %v422_v30 = vmul.f32 0.125, %v419_v14  ;;  %v360_v12 = vrot.slane %v359_v29, 1  ;;  %v223_v35 = vadd.f32 %v222_v15, %v221_v28  ;;  %v366_v40 = vrot.slane %v365_v24, 1  ;;  %v4471_v28 = vld [vmem:[#allocation7 + $0x8a4] sm:$0xf] }
  0x77   :  { %v229_v37 = vadd.f32 %v228_v31, %v227_v4  ;;  %v325_v38 = vadd.f32 %v324_v32, %v323_v13  ;;  %v331_v39 = vadd.f32 %v330_v33, %v329_v5  ;;  %v251_v58 = vsel %vm248_vm0, %v187_v34, %v244_v11  ;;  %2296 = vmatpush.bf16.msra.mxu1 %v3702_v54  ;;  %v4315_v13 = vld [vmem:[#allocation7 + $0x3c4] sm:$0xf]  ;;  %v3459_v5 = vld [vmem:[#allocation7 + $0x3d8] sm:$0xf0]  ;;  %v4465_v11 = vld [vmem:[#allocation7 + $0x874] sm:$0xf] }
  0x78   :  { %429 = vst [vmem:[#allocation1 + $0x10] ss:$2 sm:$0xff] %v422_v30  ;;  %v361_v36 = vadd.f32 %v360_v12, %v359_v29  ;;  %v367_v49 = vadd.f32 %v366_v40, %v365_v24  ;;  %v3918_v18 = vor.u32 %v4429_v51, %v3915_v52  ;;  %v3486_v8 = vor.u32 %v4321_v0, %v3483_v1  ;;  %v4417_v29 = vld [vmem:[#allocation7 + $0x6f4] sm:$0xf]  ;;  %v3867_v30 = vld [vmem:[#allocation7 + $0x708] sm:$0xf0] }
  0x79   :  { %v247_v43 = vrot.slane %v229_v37, 4  ;;  %v382_v44 = vrot.slane %v331_v39, 4  ;;  %v4110_v23 = vor.u32 %v4477_v53, %v4107_v56  ;;  %v3678_v25 = vor.u32 %v4369_v17, %v3675_v20  ;;  %v3651_v32 = vld [vmem:[#allocation7 + $0x558] sm:$0xf0]  ;;  %v4059_v12 = vld [vmem:[#allocation7 + $0x888] sm:$0xf0] }
  0x7a   :  { %v385_v6 = vrot.slane %v367_v49, 4  ;;  %2284 = vmatpush.bf16.msra.mxu0 %v3486_v8  ;;  %v3894_v15 = vor.u32 %v4423_v16, %v3891_v7  ;;  %v3462_v31 = vor.u32 %v4315_v13, %v3459_v5  ;;  %v4086_v34 = vor.u32 %v4471_v28, %v4083_v3  ;;  %v4309_v37 = vld [vmem:[#allocation7 + $0x394] sm:$0xf]  ;;  %v3627_v41 = vld [vmem:[#allocation7 + $0x528] sm:$0xf0] }
  0x7b   :  { %v254_v59 = vsel %vm248_vm0, %v223_v35, %v247_v43  ;;  %v388_v63 = vsel %vm248_vm0, %v325_v38, %v382_v44  ;;  %2297 = vmatpush.bf16.msra.mxu1 %v3678_v25  ;;  %v3654_v24 = vor.u32 %v4363_v10, %v3651_v32  ;;  %v3435_v38 = vld [vmem:[#allocation7 + $0x3a8] sm:$0xf0]  ;;  %v4357_v39 = vld [vmem:[#allocation7 + $0x514] sm:$0xf]  ;;  %v3843_v43 = vld [vmem:[#allocation7 + $0x6d8] sm:$0xf0]  ;;  %v3870_v47 = vor.u32 %v4417_v29, %v3867_v30 }
  0x7c   :  { %v263_v2 = vrot.slane %v254_v59, 7  ;;  %v402_v19 = vrot.slane %v388_v63, 6  ;;  %v391_v9 = vsel %vm248_vm0, %v361_v36, %v385_v6  ;;  %v3438_v40 = vor.u32 %v4309_v37, %v3435_v38  ;;  %v4303_v50 = vld [vmem:[#allocation7 + $0x364] sm:$0xf]  ;;  %v3411_v51 = vld [vmem:[#allocation7 + $0x378] sm:$0xf0] }
  0x7d   :  { %v403_v27 = vrot.slane %v391_v9, 5  ;;  %v3630_v44 = vor.u32 %v4357_v39, %v3627_v41  ;;  %v4062_v48 = vor.u32 %v4465_v11, %v4059_v12  ;;  %v4351_v52 = vld [vmem:[#allocation7 + $0x4e4] sm:$0xf]  ;;  %v4035_v36 = vld [vmem:[#allocation7 + $0x858] sm:$0xf0]  ;;  %v3414_v49 = vor.u32 %v4303_v50, %v3411_v51 }
  0x7e   :  { %v264_v55 = vsel %vm256_vm1, %v263_v2, %v251_v58  ;;  %2285 = vmatpush.bf16.msra.mxu0 %v3462_v31  ;;  %v4459_v53 = vld [vmem:[#allocation7 + $0x844] sm:$0xf]  ;;  %v3603_v54 = vld [vmem:[#allocation7 + $0x4f8] sm:$0xf0]  ;;  %v3387_v58 = vld [vmem:[#allocation7 + $0x348] sm:$0xf0]  ;;  %v3846_v0 = vor.u32 %v4411_v42, %v3843_v43 }
  0x7f   :  { %v434_v21 = vld.sshfl [vmem:[#allocation1 + $0x10] sm:$0xff pattern:$0x75316420]  ;;  %v435_v22 = vld.sshfl [vmem:[#allocation1 + $0x18] sm:$0xff pattern:$0x75316420]  ;;  %v265_v26 = vsel %vm258_vm2, %v263_v2, %v264_v55  ;;  %v404_v14 = vsel %vm394_vm3, %v403_v27, %v402_v19  ;;  %2298 = vmatpush.bf16.msra.mxu1 %v3654_v24  ;;  %v3606_v56 = vor.u32 %v4351_v52, %v3603_v54  ;;  %v4038_v1 = vor.u32 %v4459_v53, %v4035_v36 }
  0x80   :  { %v4968_v61 = vpack.c.bf16 %v434_v21, %v434_v21  ;;  %v4970_v62 = vpack.c.bf16 %v435_v22, %v435_v22  ;;  %v271_v4 = vadd.f32 %v265_v26, %v139_v57  ;;  %v405_v33 = vsel %vm396_vm4, %v403_v27, %v404_v14  ;;  %v4297_v57 = vld [vmem:[#allocation7 + $0x334] sm:$0xf]  ;;  %v3579_v63 = vld [vmem:[#allocation7 + $0x4c8] sm:$0xf0]  ;;  %v4291_v8 = vld [vmem:[#allocation7 + $0x304] sm:$0xf] }
  0x81   :  { %v411_v35 = vadd.f32 %v405_v33, %v277_v60  ;;  %v4345_v59 = vld [vmem:[#allocation7 + $0x4b4] sm:$0xf]  ;;  %v3819_v6 = vld [vmem:[#allocation7 + $0x6a8] sm:$0xf0]  ;;  %v3363_v20 = vld [vmem:[#allocation7 + $0x318] sm:$0xf0] }
  0x82   :  { %2212 = vmatmul.bf16.vlgmr.msra.gmra.mxu2 %v4968_v61  ;;  %2225 = vmatmul.bf16.vlgmr.msra.gmra.mxu3 %v4970_v62  ;;  %274 = vst [vmem:[#allocation2 + $0x8] sm:$0x33] %v271_v4  ;;  %v4405_v2 = vld [vmem:[#allocation7 + $0x694] sm:$0xf]  ;;  %v4011_v17 = vld [vmem:[#allocation7 + $0x828] sm:$0xf0]  ;;  %v3582_v7 = vor.u32 %v4345_v59, %v3579_v63  ;;  %v3366_v28 = vor.u32 %v4291_v8, %v3363_v20 }
  0x83   :  { %2308 = vmatpush.bf16.msra.mxu2 %v3918_v18  ;;  %2321 = vmatpush.bf16.msra.mxu3 %v4110_v23  ;;  %414 = vst [vmem:[#allocation2 + $0x8] sm:$0xcc] %v411_v35  ;;  %v4453_v16 = vld [vmem:[#allocation7 + $0x814] sm:$0xf]  ;;  %v3390_v18 = vor.u32 %v4297_v57, %v3387_v58  ;;  %v4339_v22 = vld [vmem:[#allocation7 + $0x484] sm:$0xf]  ;;  %v3822_v55 = vor.u32 %v4405_v2, %v3819_v6 }
  0x84   :  { %2286 = vmatpush.bf16.msra.mxu0 %v3438_v40  ;;  %2299 = vmatpush.bf16.msra.mxu1 %v3630_v44  ;;  %v3555_v23 = vld [vmem:[#allocation7 + $0x498] sm:$0xf0]  ;;  %v4014_v60 = vor.u32 %v4453_v16, %v4011_v17  ;;  %v4399_v9 = vld [vmem:[#allocation7 + $0x664] sm:$0xf]  ;;  %v4393_v5 = vld [vmem:[#allocation7 + $0x634] sm:$0xf] }
  0x85   :  { %v3795_v25 = vld [vmem:[#allocation7 + $0x678] sm:$0xf0]  ;;  %v4447_v26 = vld [vmem:[#allocation7 + $0x7e4] sm:$0xf]  ;;  %v3558_v3 = vor.u32 %v4339_v22, %v3555_v23  ;;  %v3771_v10 = vld [vmem:[#allocation7 + $0x648] sm:$0xf0] }
  0x86   :  { %v3987_v27 = vld [vmem:[#allocation7 + $0x7f8] sm:$0xf0]  ;;  %v3798_v4 = vor.u32 %v4399_v9, %v3795_v25  ;;  %v4441_v14 = vld [vmem:[#allocation7 + $0x7b4] sm:$0xf]  ;;  %v3153_v29 = vld [vmem:[#allocation7 + $0x158] sm:$0xf]  ;;  %v3774_v35 = vor.u32 %v4393_v5, %v3771_v10 }
  0x87   :  { %2309 = vmatpush.bf16.msra.mxu2 %v3894_v15  ;;  %2322 = vmatpush.bf16.msra.mxu3 %v4086_v34  ;;  %v3990_v13 = vor.u32 %v4447_v26, %v3987_v27  ;;  %v3963_v15 = vld [vmem:[#allocation7 + $0x7c8] sm:$0xf0]  ;;  %v4241_v30 = vld [vmem:[#allocation7 + $0x16c] sm:$0xf0]  ;;  %v3345_v31 = vld [vmem:[#allocation7 + $0x2d8] sm:$0xf] }
  0x88   :  { %2287 = vmatpush.bf16.msra.mxu0 %v3414_v49  ;;  %2300 = vmatpush.bf16.msra.mxu1 %v3606_v56  ;;  %v4289_v32 = vld [vmem:[#allocation7 + $0x2ec] sm:$0xf0]  ;;  %v4387_v33 = vld [vmem:[#allocation7 + $0x604] sm:$0xf]  ;;  %v3747_v34 = vld [vmem:[#allocation7 + $0x618] sm:$0xf0]  ;;  %v3966_v37 = vor.u32 %v4441_v14, %v3963_v15  ;;  %v3154_v41 = vor.u32 %v4241_v30, %v3153_v29 }
  0x89   :  { %v4435_v11 = vld [vmem:[#allocation7 + $0x784] sm:$0xf]  ;;  %v3939_v40 = vld [vmem:[#allocation7 + $0x798] sm:$0xf0]  ;;  %v3346_v42 = vor.u32 %v4289_v32, %v3345_v31  ;;  %v3537_v43 = vld [vmem:[#allocation7 + $0x458] sm:$0xf]  ;;  %v3750_v36 = vor.u32 %v4387_v33, %v3747_v34 }
  0x8a   :  { %v420_v19 = vld [vmem:[#allocation2 + $0x8] sm:$0xff]  ;;  %v3129_v50 = vld [vmem:[#allocation7 + $0x128] sm:$0xf]  ;;  %v4235_v51 = vld [vmem:[#allocation7 + $0x13c] sm:$0xf0]  ;;  %v3942_v49 = vor.u32 %v4435_v11, %v3939_v40 }
  0x8b   :  { %2310 = vmatpush.bf16.msra.mxu2 %v3870_v47  ;;  %2323 = vmatpush.bf16.msra.mxu3 %v4062_v48  ;;  %v423_v21 = vmul.f32 0.125, %v420_v19  ;;  %v4337_v44 = vld [vmem:[#allocation7 + $0x46c] sm:$0xf0]  ;;  %v3729_v47 = vld [vmem:[#allocation7 + $0x5d8] sm:$0xf]  ;;  %v3130_v59 = vor.u32 %v4235_v51, %v3129_v50 }
  0x8c   :  { %2288 = vmatpush.bf16.msra.mxu0 %v3390_v18  ;;  %2301 = vmatpush.bf16.msra.mxu1 %v3582_v7  ;;  %v4385_v48 = vld [vmem:[#allocation7 + $0x5ec] sm:$0xf0]  ;;  %v3321_v52 = vld [vmem:[#allocation7 + $0x2a8] sm:$0xf]  ;;  %v4283_v53 = vld [vmem:[#allocation7 + $0x2bc] sm:$0xf0]  ;;  %v3538_v54 = vor.u32 %v4337_v44, %v3537_v43 }
  0x8d   :  { %431 = vst [vmem:[#allocation1 + $0x20] ss:$2 sm:$0xff] %v423_v21  ;;  %v3730_v56 = vor.u32 %v4385_v48, %v3729_v47  ;;  %v3513_v57 = vld [vmem:[#allocation7 + $0x428] sm:$0xf]  ;;  %v4331_v58 = vld [vmem:[#allocation7 + $0x43c] sm:$0xf0]  ;;  %v3322_v63 = vor.u32 %v4283_v53, %v3321_v52 }
  0x8e   :  { %v3105_v2 = vld [vmem:[#allocation7 + $0xf8] sm:$0xf]  ;;  %v4229_v6 = vld [vmem:[#allocation7 + $0x10c] sm:$0xf0]  ;;  %v3514_v18 = vor.u32 %v4331_v58, %v3513_v57  ;;  %v3273_v9 = vld [vmem:[#allocation7 + $0x248] sm:$0xf] }
  0x8f   :  { %2311 = vmatpush.bf16.msra.mxu2 %v3846_v0  ;;  %2324 = vmatpush.bf16.msra.mxu3 %v4038_v1  ;;  %v3705_v0 = vld [vmem:[#allocation7 + $0x5a8] sm:$0xf]  ;;  %v4379_v1 = vld [vmem:[#allocation7 + $0x5bc] sm:$0xf0]  ;;  %v3297_v16 = vld [vmem:[#allocation7 + $0x278] sm:$0xf]  ;;  %v3106_v20 = vor.u32 %v4229_v6, %v3105_v2 }
  0x90   :  { %2289 = vmatpush.bf16.msra.mxu0 %v3366_v28  ;;  %2302 = vmatpush.bf16.msra.mxu1 %v3558_v3  ;;  %v4277_v17 = vld [vmem:[#allocation7 + $0x28c] sm:$0xf0]  ;;  %v3706_v19 = vor.u32 %v4379_v1, %v3705_v0  ;;  %v3489_v7 = vld [vmem:[#allocation7 + $0x3f8] sm:$0xf]  ;;  %v4271_v25 = vld [vmem:[#allocation7 + $0x25c] sm:$0xf0] }
  0x91   :  { %v4325_v8 = vld [vmem:[#allocation7 + $0x40c] sm:$0xf0]  ;;  %v3298_v21 = vor.u32 %v4277_v17, %v3297_v16  ;;  %v3681_v22 = vld [vmem:[#allocation7 + $0x578] sm:$0xf]  ;;  %v3465_v28 = vld [vmem:[#allocation7 + $0x3c8] sm:$0xf] }
  0x92   :  { %2264 = vmatmul.bf16.vlgmr.msrb.gmra.mxu2 %v4954_v45  ;;  %2277 = vmatmul.bf16.vlgmr.msrb.gmra.mxu3 %v4956_v46  ;;  %v4373_v23 = vld [vmem:[#allocation7 + $0x58c] sm:$0xf0]  ;;  %v3490_v26 = vor.u32 %v4325_v8, %v3489_v7  ;;  %v4319_v3 = vld [vmem:[#allocation7 + $0x3dc] sm:$0xf0]  ;;  %v3657_v5 = vld [vmem:[#allocation7 + $0x548] sm:$0xf] }
  0x93   :  { %2312 = vmatpush.bf16.msra.mxu2 %v3822_v55  ;;  %2325 = vmatpush.bf16.msra.mxu3 %v4014_v60  ;;  %v3081_v55 = vld [vmem:[#allocation7 + $0xc8] sm:$0xf]  ;;  %v4223_v60 = vld [vmem:[#allocation7 + $0xdc] sm:$0xf0]  ;;  %v3682_v27 = vor.u32 %v4373_v23, %v3681_v22  ;;  %v3057_v14 = vld [vmem:[#allocation7 + $0x98] sm:$0xf]  ;;  %v3466_v31 = vor.u32 %v4319_v3, %v3465_v28 }
  0x94   :  { %v436_v12 = vld.sshfl [vmem:[#allocation1 + $0x20] sm:$0xff pattern:$0x75316420]  ;;  %v437_v24 = vld.sshfl [vmem:[#allocation1 + $0x28] sm:$0xff pattern:$0x75316420] }
  0x95   :  { %v4979_v38 = vpack.c.bf16 %v436_v12, %v436_v12  ;;  %v4981_v39 = vpack.c.bf16 %v437_v24, %v437_v24  ;;  %v4367_v10 = vld [vmem:[#allocation7 + $0x55c] sm:$0xf0]  ;;  %v4217_v15 = vld [vmem:[#allocation7 + $0xac] sm:$0xf0]  ;;  %v3249_v29 = vld [vmem:[#allocation7 + $0x218] sm:$0xf] }
  0x96   :  { %v4265_v30 = vld [vmem:[#allocation7 + $0x22c] sm:$0xf0]  ;;  %v3658_v32 = vor.u32 %v4367_v10, %v3657_v5  ;;  %v3441_v33 = vld [vmem:[#allocation7 + $0x398] sm:$0xf]  ;;  %v3058_v11 = vor.u32 %v4217_v15, %v3057_v14  ;;  %v4211_v40 = vld [vmem:[#allocation7 + $0x7c] sm:$0xf0] }
  0x97   :  { %2313 = vmatpush.bf16.msra.mxu2 %v3798_v4  ;;  %2326 = vmatpush.bf16.msra.mxu3 %v3990_v13  ;;  %v3082_v4 = vor.u32 %v4223_v60, %v3081_v55  ;;  %v3274_v13 = vor.u32 %v4271_v25, %v3273_v9  ;;  %v4313_v34 = vld [vmem:[#allocation7 + $0x3ac] sm:$0xf0]  ;;  %v3250_v12 = vor.u32 %v4265_v30, %v3249_v29  ;;  %v3633_v24 = vld [vmem:[#allocation7 + $0x518] sm:$0xf]  ;;  %v3417_v47 = vld [vmem:[#allocation7 + $0x368] sm:$0xf] }
  0x98   :  { %2238 = vmatmul.bf16.vlgmr.msrb.gmra.mxu0 %v4979_v38  ;;  %2251 = vmatmul.bf16.vlgmr.msrb.gmra.mxu1 %v4981_v39  ;;  %v3442_v43 = vor.u32 %v4313_v34, %v3441_v33  ;;  %v4307_v48 = vld [vmem:[#allocation7 + $0x37c] sm:$0xf0]  ;;  %v3609_v52 = vld [vmem:[#allocation7 + $0x4e8] sm:$0xf]  ;;  %v3585_v0 = vld [vmem:[#allocation7 + $0x4b8] sm:$0xf] }
  0x99   :  { %2334 = vmatpush.bf16.msrb.mxu0 %v3154_v41  ;;  %2347 = vmatpush.bf16.msrb.mxu1 %v3346_v42  ;;  %v3225_v41 = vld [vmem:[#allocation7 + $0x1e8] sm:$0xf]  ;;  %v4259_v42 = vld [vmem:[#allocation7 + $0x1fc] sm:$0xf0]  ;;  %v3418_v57 = vor.u32 %v4307_v48, %v3417_v47  ;;  %v4349_v6 = vld [vmem:[#allocation7 + $0x4cc] sm:$0xf0] }
  0x9a   :  { %v3226_v51 = vor.u32 %v4259_v42, %v3225_v41  ;;  %v4355_v53 = vld [vmem:[#allocation7 + $0x4fc] sm:$0xf0]  ;;  %v2985_v16 = vld [vmem:[#allocation7 + $0x8] sm:$0xf]  ;;  %v3921_v7 = vld [vmem:[#allocation7 + $0x758] sm:$0xf]  ;;  %v3586_v23 = vor.u32 %v4349_v6, %v3585_v0 }
  0x9b   :  { %2314 = vmatpush.bf16.msra.mxu2 %v3774_v35  ;;  %2327 = vmatpush.bf16.msra.mxu3 %v3966_v37  ;;  %v4361_v35 = vld [vmem:[#allocation7 + $0x52c] sm:$0xf0]  ;;  %v3033_v37 = vld [vmem:[#allocation7 + $0x68] sm:$0xf]  ;;  %v3610_v58 = vor.u32 %v4355_v53, %v3609_v52  ;;  %v4199_v17 = vld [vmem:[#allocation7 + $0x1c] sm:$0xf0] }
  0x9c   :  { %v3634_v44 = vor.u32 %v4361_v35, %v3633_v24  ;;  %v3034_v50 = vor.u32 %v4211_v40, %v3033_v37  ;;  %v4433_v8 = vld [vmem:[#allocation7 + $0x76c] sm:$0xf0]  ;;  %v3369_v55 = vld [vmem:[#allocation7 + $0x308] sm:$0xf]  ;;  %v4295_v60 = vld [vmem:[#allocation7 + $0x31c] sm:$0xf0]  ;;  %v2986_v25 = vor.u32 %v4199_v17, %v2985_v16 }
  0x9d   :  { %2335 = vmatpush.bf16.msrb.mxu0 %v3130_v59  ;;  %2348 = vmatpush.bf16.msrb.mxu1 %v3322_v63  ;;  %v3393_v59 = vld [vmem:[#allocation7 + $0x338] sm:$0xf]  ;;  %v4301_v63 = vld [vmem:[#allocation7 + $0x34c] sm:$0xf0]  ;;  %v3561_v9 = vld [vmem:[#allocation7 + $0x488] sm:$0xf] }
  0x9e   :  { %v3394_v22 = vor.u32 %v4301_v63, %v3393_v59  ;;  %v4238_v28 = vld [vmem:[#allocation7 + $0x15c] sm:$0xf]  ;;  %v3155_v3 = vld [vmem:[#allocation7 + $0x170] sm:$0xf0]  ;;  %v3897_v14 = vld [vmem:[#allocation7 + $0x728] sm:$0xf] }
  0x9f   :  { %2315 = vmatpush.bf16.msra.mxu2 %v3750_v36  ;;  %2328 = vmatpush.bf16.msra.mxu3 %v3942_v49  ;;  %v3009_v36 = vld [vmem:[#allocation7 + $0x38] sm:$0xf]  ;;  %v4205_v49 = vld [vmem:[#allocation7 + $0x4c] sm:$0xf0]  ;;  %v4286_v5 = vld [vmem:[#allocation7 + $0x2dc] sm:$0xf]  ;;  %v3158_v33 = vor.u32 %v4238_v28, %v3155_v3 }
  0xa0   :  { %v3010_v1 = vor.u32 %v4205_v49, %v3009_v36  ;;  %v3347_v10 = vld [vmem:[#allocation7 + $0x2f0] sm:$0xf0]  ;;  %v4427_v15 = vld [vmem:[#allocation7 + $0x73c] sm:$0xf0]  ;;  %v4089_v29 = vld [vmem:[#allocation7 + $0x8a8] sm:$0xf] }
  0xa1   :  { %2336 = vmatpush.bf16.msrb.mxu0 %v3106_v20  ;;  %2349 = vmatpush.bf16.msrb.mxu1 %v3298_v21  ;;  %v4113_v20 = vld [vmem:[#allocation7 + $0x8d8] sm:$0xf]  ;;  %v4481_v21 = vld [vmem:[#allocation7 + $0x8ec] sm:$0xf0]  ;;  %v4475_v30 = vld [vmem:[#allocation7 + $0x8bc] sm:$0xf0]  ;;  %v3350_v34 = vor.u32 %v4286_v5, %v3347_v10  ;;  %v3898_v24 = vor.u32 %v4427_v15, %v3897_v14 }
  0xa2   :  { %2316 = vmatmul.bf16.vlgmr.msra.gmra.mxu2 %v4979_v38  ;;  %2329 = vmatmul.bf16.vlgmr.msra.gmra.mxu3 %v4981_v39  ;;  %v4090_v35 = vor.u32 %v4475_v30, %v4089_v29  ;;  %v4280_v37 = vld [vmem:[#allocation7 + $0x2ac] sm:$0xf]  ;;  %v3323_v40 = vld [vmem:[#allocation7 + $0x2c0] sm:$0xf0]  ;;  %v3873_v41 = vld [vmem:[#allocation7 + $0x6f8] sm:$0xf] }
  0xa3   :  { %2360 = vmatpush.bf16.msrb.mxu2 %v3538_v54  ;;  %2373 = vmatpush.bf16.msrb.mxu3 %v3730_v56  ;;  %v3201_v54 = vld [vmem:[#allocation7 + $0x1b8] sm:$0xf]  ;;  %v4253_v56 = vld [vmem:[#allocation7 + $0x1cc] sm:$0xf0]  ;;  %v3326_v48 = vor.u32 %v4280_v37, %v3323_v40  ;;  %v4274_v36 = vld [vmem:[#allocation7 + $0x27c] sm:$0xf] }
  0xa4   :  { %v3202_v2 = vor.u32 %v4253_v56, %v3201_v54  ;;  %v4421_v42 = vld [vmem:[#allocation7 + $0x70c] sm:$0xf0]  ;;  %v3299_v49 = vld [vmem:[#allocation7 + $0x290] sm:$0xf0]  ;;  %v3849_v54 = vld [vmem:[#allocation7 + $0x6c8] sm:$0xf] }
  0xa5   :  { %2337 = vmatpush.bf16.msrb.mxu0 %v3082_v4  ;;  %2350 = vmatpush.bf16.msrb.mxu1 %v3274_v13  ;;  %v3922_v4 = vor.u32 %v4433_v8, %v3921_v7  ;;  %v4114_v13 = vor.u32 %v4481_v21, %v4113_v20  ;;  %v3874_v52 = vor.u32 %v4421_v42, %v3873_v41  ;;  %v4415_v56 = vld [vmem:[#allocation7 + $0x6dc] sm:$0xf0]  ;;  %v4220_v0 = vld [vmem:[#allocation7 + $0xcc] sm:$0xf]  ;;  %v3275_v17 = vld [vmem:[#allocation7 + $0x260] sm:$0xf0] }
  0xa6   :  { %v3302_v63 = vor.u32 %v4274_v36, %v3299_v49  ;;  %v4268_v16 = vld [vmem:[#allocation7 + $0x24c] sm:$0xf]  ;;  %v4017_v7 = vld [vmem:[#allocation7 + $0x818] sm:$0xf]  ;;  %v4457_v8 = vld [vmem:[#allocation7 + $0x82c] sm:$0xf0] }
  0xa7   :  { %2361 = vmatpush.bf16.msrb.mxu2 %v3514_v18  ;;  %2374 = vmatpush.bf16.msrb.mxu3 %v3706_v19  ;;  %v3177_v18 = vld [vmem:[#allocation7 + $0x188] sm:$0xf]  ;;  %v4247_v19 = vld [vmem:[#allocation7 + $0x19c] sm:$0xf0]  ;;  %v3278_v21 = vor.u32 %v4268_v16, %v3275_v17  ;;  %v4208_v5 = vld [vmem:[#allocation7 + $0x6c] sm:$0xf] }
  0xa8   :  { %2290 = vmatmul.bf16.vlgmr.msra.gmra.mxu0 %v4968_v61  ;;  %2303 = vmatmul.bf16.vlgmr.msra.gmra.mxu1 %v4970_v62  ;;  %v3993_v28 = vld [vmem:[#allocation7 + $0x7e8] sm:$0xf]  ;;  %v4451_v3 = vld [vmem:[#allocation7 + $0x7fc] sm:$0xf0]  ;;  %v3035_v10 = vld [vmem:[#allocation7 + $0x80] sm:$0xf0] }
  0xa9   :  { %2338 = vmatpush.bf16.msrb.mxu0 %v3058_v11  ;;  %2351 = vmatpush.bf16.msrb.mxu1 %v3250_v12  ;;  %v4232_v11 = vld [vmem:[#allocation7 + $0x12c] sm:$0xf]  ;;  %v3131_v12 = vld [vmem:[#allocation7 + $0x140] sm:$0xf0]  ;;  %v3994_v15 = vor.u32 %v4451_v3, %v3993_v28  ;;  %v4250_v37 = vld [vmem:[#allocation7 + $0x1bc] sm:$0xf] }
  0xaa   :  { %v3134_v47 = vor.u32 %v4232_v11, %v3131_v12  ;;  %v4256_v29 = vld [vmem:[#allocation7 + $0x1ec] sm:$0xf]  ;;  %v3227_v30 = vld [vmem:[#allocation7 + $0x200] sm:$0xf0]  ;;  %v3038_v11 = vor.u32 %v4208_v5, %v3035_v10  ;;  %v3203_v42 = vld [vmem:[#allocation7 + $0x1d0] sm:$0xf0] }
  0xab   :  { %2362 = vmatpush.bf16.msrb.mxu2 %v3490_v26  ;;  %2375 = vmatpush.bf16.msrb.mxu3 %v3682_v27  ;;  %v3178_v26 = vor.u32 %v4247_v19, %v3177_v18  ;;  %v4343_v27 = vld [vmem:[#allocation7 + $0x49c] sm:$0xf0]  ;;  %v3825_v18 = vld [vmem:[#allocation7 + $0x698] sm:$0xf]  ;;  %v4409_v19 = vld [vmem:[#allocation7 + $0x6ac] sm:$0xf0]  ;;  %v3230_v12 = vor.u32 %v4256_v29, %v3227_v30  ;;  %v3206_v49 = vor.u32 %v4250_v37, %v3203_v42 }
  0xac   :  { %v4478_v16 = vld [vmem:[#allocation7 + $0x8dc] sm:$0xf]  ;;  %v4115_v17 = vld [vmem:[#allocation7 + $0x8f0] sm:$0xf0]  ;;  %v4412_v37 = vld [vmem:[#allocation7 + $0x6cc] sm:$0xf] }
  0xad   :  { %2339 = vmatpush.bf16.msrb.mxu0 %v3034_v50  ;;  %2352 = vmatpush.bf16.msrb.mxu1 %v3226_v51  ;;  %v4226_v50 = vld [vmem:[#allocation7 + $0xfc] sm:$0xf]  ;;  %v3107_v51 = vld [vmem:[#allocation7 + $0x110] sm:$0xf0]  ;;  %v4043_v42 = vld [vmem:[#allocation7 + $0x860] sm:$0xf0] }
  0xae   :  { %v3110_v59 = vor.u32 %v4226_v50, %v3107_v51  ;;  %v4334_v50 = vld [vmem:[#allocation7 + $0x45c] sm:$0xf]  ;;  %v3539_v51 = vld [vmem:[#allocation7 + $0x470] sm:$0xf0] }
  0xaf   :  { %2363 = vmatpush.bf16.msrb.mxu2 %v3466_v31  ;;  %2376 = vmatpush.bf16.msrb.mxu3 %v3658_v32  ;;  %v3370_v31 = vor.u32 %v4295_v60, %v3369_v55  ;;  %v3562_v32 = vor.u32 %v4343_v27, %v3561_v9  ;;  %v3826_v55 = vor.u32 %v4409_v19, %v3825_v18  ;;  %v4262_v9 = vld [vmem:[#allocation7 + $0x21c] sm:$0xf]  ;;  %v4403_v27 = vld [vmem:[#allocation7 + $0x67c] sm:$0xf0]  ;;  %v4328_v18 = vld [vmem:[#allocation7 + $0x42c] sm:$0xf] }
  0xb0   :  { %v4018_v60 = vor.u32 %v4457_v8, %v4017_v7  ;;  %v3515_v8 = vld [vmem:[#allocation7 + $0x440] sm:$0xf0]  ;;  %v4322_v28 = vld [vmem:[#allocation7 + $0x3fc] sm:$0xf]  ;;  %v3491_v3 = vld [vmem:[#allocation7 + $0x410] sm:$0xf0] }
  0xb1   :  { %2340 = vmatpush.bf16.msrb.mxu0 %v3010_v1  ;;  %2353 = vmatpush.bf16.msrb.mxu1 %v3202_v2  ;;  %v3083_v1 = vld [vmem:[#allocation7 + $0xe0] sm:$0xf0]  ;;  %v3850_v2 = vor.u32 %v4415_v56, %v3849_v54  ;;  %v4196_v54 = vld [vmem:[#allocation7 + $0xc] sm:$0xf]  ;;  %v4466_v29 = vld [vmem:[#allocation7 + $0x87c] sm:$0xf] }
  0xb2   :  { %v3086_v20 = vor.u32 %v4220_v0, %v3083_v1  ;;  %v2987_v56 = vld [vmem:[#allocation7 + $0x20] sm:$0xf0]  ;;  %v4430_v0 = vld [vmem:[#allocation7 + $0x75c] sm:$0xf]  ;;  %v3542_v1 = vor.u32 %v4334_v50, %v3539_v51  ;;  %v4067_v30 = vld [vmem:[#allocation7 + $0x890] sm:$0xf0] }
  0xb3   :  { %2364 = vmatpush.bf16.msrb.mxu2 %v3442_v43  ;;  %2377 = vmatpush.bf16.msrb.mxu3 %v3634_v44  ;;  %v4065_v43 = vld [vmem:[#allocation7 + $0x878] sm:$0xf]  ;;  %v4469_v44 = vld [vmem:[#allocation7 + $0x88c] sm:$0xf0]  ;;  %v2990_v19 = vor.u32 %v4196_v54, %v2987_v56  ;;  %v4358_v50 = vld [vmem:[#allocation7 + $0x51c] sm:$0xf] }
  0xb4   :  { %v4066_v53 = vor.u32 %v4469_v44, %v4065_v43  ;;  %v3753_v43 = vld [vmem:[#allocation7 + $0x608] sm:$0xf]  ;;  %v4391_v44 = vld [vmem:[#allocation7 + $0x61c] sm:$0xf0]  ;;  %v3635_v51 = vld [vmem:[#allocation7 + $0x530] sm:$0xf0] }
  0xb5   :  { %2341 = vmatpush.bf16.msrb.mxu0 %v2986_v25  ;;  %2354 = vmatpush.bf16.msrb.mxu1 %v3178_v26  ;;  %v3251_v25 = vld [vmem:[#allocation7 + $0x230] sm:$0xf0]  ;;  %v3801_v26 = vld [vmem:[#allocation7 + $0x668] sm:$0xf]  ;;  %v4454_v54 = vld [vmem:[#allocation7 + $0x81c] sm:$0xf] }
  0xb6   :  { %v3802_v14 = vor.u32 %v4403_v27, %v3801_v26  ;;  %v3518_v26 = vor.u32 %v4328_v18, %v3515_v8  ;;  %v4019_v56 = vld [vmem:[#allocation7 + $0x830] sm:$0xf0]  ;;  %v4448_v18 = vld [vmem:[#allocation7 + $0x7ec] sm:$0xf] }
  0xb7   :  { %2365 = vmatpush.bf16.msrb.mxu2 %v3418_v57  ;;  %2378 = vmatpush.bf16.msrb.mxu3 %v3610_v58  ;;  %v4041_v57 = vld [vmem:[#allocation7 + $0x848] sm:$0xf]  ;;  %v4463_v58 = vld [vmem:[#allocation7 + $0x85c] sm:$0xf0] }
  0xb8   :  { %2342 = vmatmul.bf16.vlgmr.msrb.gmra.mxu0 %v4954_v45  ;;  %2355 = vmatmul.bf16.vlgmr.msrb.gmra.mxu1 %v4956_v46  ;;  %v4042_v6 = vor.u32 %v4463_v58, %v4041_v57  ;;  %v3754_v57 = vor.u32 %v4391_v44, %v3753_v43 }
  0xb9   :  { %2386 = vmatpush.bf16.msra.mxu0 %v3922_v4  ;;  %2399 = vmatpush.bf16.msra.mxu1 %v4114_v13  ;;  %v3254_v13 = vor.u32 %v4262_v9, %v3251_v25  ;;  %v4472_v9 = vld [vmem:[#allocation7 + $0x8ac] sm:$0xf]  ;;  %v4091_v25 = vld [vmem:[#allocation7 + $0x8c0] sm:$0xf0] }
  0xba   :  { %v4094_v10 = vor.u32 %v4472_v9, %v4091_v25 }
  0xbb   :  { %2366 = vmatpush.bf16.msrb.mxu2 %v3394_v22  ;;  %2379 = vmatpush.bf16.msrb.mxu3 %v3586_v23  ;;  %v4214_v22 = vld [vmem:[#allocation7 + $0x9c] sm:$0xf]  ;;  %v3059_v23 = vld [vmem:[#allocation7 + $0xb0] sm:$0xf0] }
  0xbc   :  { %v3062_v4 = vor.u32 %v4214_v22, %v3059_v23  ;;  %v4118_v23 = vor.u32 %v4478_v16, %v4115_v17  ;;  %v4400_v16 = vld [vmem:[#allocation7 + $0x66c] sm:$0xf]  ;;  %v3803_v17 = vld [vmem:[#allocation7 + $0x680] sm:$0xf0] }
  0xbd   :  { %2387 = vmatpush.bf16.msra.mxu0 %v3898_v24  ;;  %2400 = vmatpush.bf16.msra.mxu1 %v4090_v35  ;;  %v4202_v24 = vld [vmem:[#allocation7 + $0x3c] sm:$0xf]  ;;  %v3011_v35 = vld [vmem:[#allocation7 + $0x50] sm:$0xf0]  ;;  %v3806_v9 = vor.u32 %v4400_v16, %v3803_v17  ;;  %v3113_v17 = vld [vmem:[#allocation7 + $0x100] sm:$0xf] }
  0xbe   :  { %v3014_v36 = vor.u32 %v4202_v24, %v3011_v35  ;;  %v4070_v35 = vor.u32 %v4466_v29, %v4067_v30  ;;  %v3563_v29 = vld [vmem:[#allocation7 + $0x4a0] sm:$0xf0]  ;;  %v4388_v30 = vld [vmem:[#allocation7 + $0x60c] sm:$0xf] }
  0xbf   :  { %2367 = vmatpush.bf16.msrb.mxu2 %v3370_v31  ;;  %2380 = vmatpush.bf16.msrb.mxu3 %v3562_v32  ;;  %v3777_v31 = vld [vmem:[#allocation7 + $0x638] sm:$0xf]  ;;  %v4397_v32 = vld [vmem:[#allocation7 + $0x64c] sm:$0xf0] }
  0xc0   :  { %v3778_v40 = vor.u32 %v4397_v32, %v3777_v31  ;;  %v3494_v31 = vor.u32 %v4322_v28, %v3491_v3  ;;  %v4442_v3 = vld [vmem:[#allocation7 + $0x7bc] sm:$0xf] }
  0xc1   :  { %2388 = vmatpush.bf16.msra.mxu0 %v3874_v52  ;;  %2401 = vmatpush.bf16.msra.mxu1 %v4066_v53  ;;  %v4382_v52 = vld [vmem:[#allocation7 + $0x5dc] sm:$0xf]  ;;  %v3731_v53 = vld [vmem:[#allocation7 + $0x5f0] sm:$0xf0] }
  0xc2   :  { %2368 = vmatmul.bf16.vlgmr.msrb.gmra.mxu2 %v4968_v61  ;;  %2381 = vmatmul.bf16.vlgmr.msrb.gmra.mxu3 %v4970_v62 }
  0xc3   :  { %2412 = vmatpush.bf16.msra.mxu2 %v3158_v33  ;;  %2425 = vmatpush.bf16.msra.mxu3 %v3350_v34  ;;  %v3969_v33 = vld [vmem:[#allocation7 + $0x7b8] sm:$0xf]  ;;  %v4445_v34 = vld [vmem:[#allocation7 + $0x7cc] sm:$0xf0] }
  0xc4   :  { %v3970_v41 = vor.u32 %v4445_v34, %v3969_v33  ;;  %v4316_v33 = vld [vmem:[#allocation7 + $0x3cc] sm:$0xf]  ;;  %v3467_v34 = vld [vmem:[#allocation7 + $0x3e0] sm:$0xf0] }
  0xc5   :  { %2389 = vmatpush.bf16.msra.mxu0 %v3850_v2  ;;  %2402 = vmatpush.bf16.msra.mxu1 %v4042_v6  ;;  %v3734_v2 = vor.u32 %v4382_v52, %v3731_v53  ;;  %v3923_v6 = vld [vmem:[#allocation7 + $0x770] sm:$0xf0]  ;;  %v3470_v43 = vor.u32 %v4316_v33, %v3467_v34 }
  0xc6   :  { %v3926_v22 = vor.u32 %v4430_v0, %v3923_v6  ;;  %v4352_v0 = vld [vmem:[#allocation7 + $0x4ec] sm:$0xf]  ;;  %v4022_v6 = vor.u32 %v4454_v54, %v4019_v56  ;;  %v4236_v54 = vld [vmem:[#allocation7 + $0x144] sm:$0xf0] }
  0xc7   :  { %2413 = vmatpush.bf16.msra.mxu2 %v3134_v47  ;;  %2426 = vmatpush.bf16.msra.mxu3 %v3326_v48  ;;  %v3945_v47 = vld [vmem:[#allocation7 + $0x788] sm:$0xf]  ;;  %v4439_v48 = vld [vmem:[#allocation7 + $0x79c] sm:$0xf0] }
  0xc8   :  { %v3946_v58 = vor.u32 %v4439_v48, %v3945_v47  ;;  %v4310_v47 = vld [vmem:[#allocation7 + $0x39c] sm:$0xf]  ;;  %v3443_v48 = vld [vmem:[#allocation7 + $0x3b0] sm:$0xf0] }
  0xc9   :  { %2390 = vmatpush.bf16.msra.mxu0 %v3826_v55  ;;  %2403 = vmatpush.bf16.msra.mxu1 %v4018_v60  ;;  %v4424_v55 = vld [vmem:[#allocation7 + $0x72c] sm:$0xf]  ;;  %v3899_v60 = vld [vmem:[#allocation7 + $0x740] sm:$0xf0] }
  0xca   :  { %v3902_v5 = vor.u32 %v4424_v55, %v3899_v60  ;;  %v3587_v55 = vld [vmem:[#allocation7 + $0x4d0] sm:$0xf0] }
  0xcb   :  { %2414 = vmatpush.bf16.msra.mxu2 %v3110_v59  ;;  %2427 = vmatpush.bf16.msra.mxu3 %v3302_v63  ;;  %v4244_v59 = vld [vmem:[#allocation7 + $0x18c] sm:$0xf]  ;;  %v3179_v63 = vld [vmem:[#allocation7 + $0x1a0] sm:$0xf0] }
  0xcc   :  { %v3182_v7 = vor.u32 %v4244_v59, %v3179_v63  ;;  %v4304_v59 = vld [vmem:[#allocation7 + $0x36c] sm:$0xf]  ;;  %v3419_v63 = vld [vmem:[#allocation7 + $0x380] sm:$0xf0] }
  0xcd   :  { %2391 = vmatpush.bf16.msra.mxu0 %v3802_v14  ;;  %2404 = vmatpush.bf16.msra.mxu1 %v3994_v15  ;;  %v4418_v14 = vld [vmem:[#allocation7 + $0x6fc] sm:$0xf]  ;;  %v3875_v15 = vld [vmem:[#allocation7 + $0x710] sm:$0xf0] }
  0xce   :  { %v3878_v24 = vor.u32 %v4418_v14, %v3875_v15  ;;  %v3371_v14 = vld [vmem:[#allocation7 + $0x320] sm:$0xf0]  ;;  %v4340_v15 = vld [vmem:[#allocation7 + $0x48c] sm:$0xf] }
  0xcf   :  { %2415 = vmatpush.bf16.msra.mxu2 %v3086_v20  ;;  %2428 = vmatpush.bf16.msra.mxu3 %v3278_v21  ;;  %v4376_v20 = vld [vmem:[#allocation7 + $0x5ac] sm:$0xf]  ;;  %v3707_v21 = vld [vmem:[#allocation7 + $0x5c0] sm:$0xf0] }
  0xd0   :  { %v3710_v27 = vor.u32 %v4376_v20, %v3707_v21  ;;  %v4298_v20 = vld [vmem:[#allocation7 + $0x33c] sm:$0xf] }
  0xd1   :  { %2392 = vmatpush.bf16.msra.mxu0 %v3778_v40  ;;  %2405 = vmatpush.bf16.msra.mxu1 %v3970_v41  ;;  %v3851_v40 = vld [vmem:[#allocation7 + $0x6e0] sm:$0xf0]  ;;  %v4460_v41 = vld [vmem:[#allocation7 + $0x84c] sm:$0xf] }
  0xd2   :  { %v3854_v52 = vor.u32 %v4412_v37, %v3851_v40  ;;  %v4046_v53 = vor.u32 %v4460_v41, %v4043_v42  ;;  %v3947_v37 = vld [vmem:[#allocation7 + $0x7a0] sm:$0xf0]  ;;  %v3545_v40 = vld [vmem:[#allocation7 + $0x460] sm:$0xf]  ;;  %v3566_v42 = vor.u32 %v4340_v15, %v3563_v29  ;;  %v4368_v15 = vld [vmem:[#allocation7 + $0x564] sm:$0xf0] }
  0xd3   :  { %2416 = vmatpush.bf16.msra.mxu2 %v3062_v4  ;;  %2429 = vmatpush.bf16.msra.mxu3 %v3254_v13  ;;  %v4370_v4 = vld [vmem:[#allocation7 + $0x57c] sm:$0xf]  ;;  %v3683_v13 = vld [vmem:[#allocation7 + $0x590] sm:$0xf0] }
  0xd4   :  { %v3686_v32 = vor.u32 %v4370_v4, %v3683_v13  ;;  %v3971_v4 = vld [vmem:[#allocation7 + $0x7d0] sm:$0xf0]  ;;  %v4292_v13 = vld [vmem:[#allocation7 + $0x30c] sm:$0xf] }
  0xd5   :  { %2393 = vmatpush.bf16.msra.mxu0 %v3754_v57  ;;  %2406 = vmatpush.bf16.msra.mxu1 %v3946_v58  ;;  %v3446_v57 = vor.u32 %v4310_v47, %v3443_v48  ;;  %v3638_v58 = vor.u32 %v4358_v50, %v3635_v51  ;;  %v3974_v34 = vor.u32 %v4442_v3, %v3971_v4  ;;  %v4386_v47 = vld [vmem:[#allocation7 + $0x5f4] sm:$0xf0]  ;;  %v3281_v4 = vld [vmem:[#allocation7 + $0x250] sm:$0xf] }
  0xd6   :  { %v3374_v41 = vor.u32 %v4292_v13, %v3371_v14  ;;  %v4272_v13 = vld [vmem:[#allocation7 + $0x264] sm:$0xf0]  ;;  %v3665_v14 = vld [vmem:[#allocation7 + $0x550] sm:$0xf] }
  0xd7   :  { %2417 = vmatpush.bf16.msra.mxu2 %v3038_v11  ;;  %2430 = vmatpush.bf16.msra.mxu3 %v3230_v12  ;;  %v4364_v11 = vld [vmem:[#allocation7 + $0x54c] sm:$0xf]  ;;  %v3659_v12 = vld [vmem:[#allocation7 + $0x560] sm:$0xf0] }
  0xd8   :  { %2394 = vmatmul.bf16.vlgmr.msra.gmra.mxu0 %v4979_v38  ;;  %2407 = vmatmul.bf16.vlgmr.msra.gmra.mxu1 %v4981_v39  ;;  %v3662_v44 = vor.u32 %v4364_v11, %v3659_v12  ;;  %v4242_v11 = vld [vmem:[#allocation7 + $0x174] sm:$0xf0]  ;;  %v3353_v12 = vld [vmem:[#allocation7 + $0x2e0] sm:$0xf] }
  0xd9   :  { %2438 = vmatpush.bf16.msrb.mxu0 %v3542_v1  ;;  %2451 = vmatpush.bf16.msrb.mxu1 %v3734_v2  ;;  %v3611_v1 = vld [vmem:[#allocation7 + $0x500] sm:$0xf0] }
  0xda   :  { %v3614_v8 = vor.u32 %v4352_v0, %v3611_v1  ;;  %v4332_v0 = vld [vmem:[#allocation7 + $0x444] sm:$0xf0]  ;;  %v3713_v1 = vld [vmem:[#allocation7 + $0x5b0] sm:$0xf] }
  0xdb   :  { %2418 = vmatpush.bf16.msra.mxu2 %v3014_v36  ;;  %2431 = vmatpush.bf16.msra.mxu3 %v3206_v49  ;;  %v4406_v36 = vld [vmem:[#allocation7 + $0x69c] sm:$0xf]  ;;  %v3827_v49 = vld [vmem:[#allocation7 + $0x6b0] sm:$0xf0] }
  0xdc   :  { %v3830_v2 = vor.u32 %v4406_v36, %v3827_v49  ;;  %v3137_v49 = vld [vmem:[#allocation7 + $0x130] sm:$0xf] }
  0xdd   :  { %2439 = vmatpush.bf16.msrb.mxu0 %v3518_v26  ;;  %2452 = vmatpush.bf16.msrb.mxu1 %v3710_v27  ;;  %v4394_v26 = vld [vmem:[#allocation7 + $0x63c] sm:$0xf]  ;;  %v3779_v27 = vld [vmem:[#allocation7 + $0x650] sm:$0xf0] }
  0xde   :  { %v3782_v33 = vor.u32 %v4394_v26, %v3779_v27  ;;  %v4224_v26 = vld [vmem:[#allocation7 + $0xe4] sm:$0xf0] }
  0xdf   :  { %2419 = vmatpush.bf16.msra.mxu2 %v2990_v19  ;;  %2432 = vmatpush.bf16.msra.mxu3 %v3182_v7  ;;  %v3995_v19 = vld [vmem:[#allocation7 + $0x800] sm:$0xf0]  ;;  %v3422_v7 = vor.u32 %v4304_v59, %v3419_v63  ;;  %v4284_v59 = vld [vmem:[#allocation7 + $0x2c4] sm:$0xf0]  ;;  %v3521_v63 = vld [vmem:[#allocation7 + $0x430] sm:$0xf] }
  0xe0   :  { %v3998_v25 = vor.u32 %v4448_v18, %v3995_v19  ;;  %v4230_v18 = vld [vmem:[#allocation7 + $0x114] sm:$0xf0]  ;;  %v3522_v19 = vor.u32 %v4332_v0, %v3521_v63  ;;  %v3017_v63 = vld [vmem:[#allocation7 + $0x40] sm:$0xf] }
  0xe1   :  { %2440 = vmatpush.bf16.msrb.mxu0 %v3494_v31  ;;  %2453 = vmatpush.bf16.msrb.mxu1 %v3686_v32  ;;  %v3755_v31 = vld [vmem:[#allocation7 + $0x620] sm:$0xf0]  ;;  %v3161_v32 = vld [vmem:[#allocation7 + $0x160] sm:$0xf]  ;;  %v4206_v0 = vld [vmem:[#allocation7 + $0x54] sm:$0xf0] }
  0xe2   :  { %2420 = vmatmul.bf16.vlgmr.msra.gmra.mxu2 %v4954_v45  ;;  %2433 = vmatmul.bf16.vlgmr.msra.gmra.mxu3 %v4956_v46  ;;  %v3162_v48 = vor.u32 %v4242_v11, %v3161_v32  ;;  %v4218_v32 = vld [vmem:[#allocation7 + $0xb4] sm:$0xf0]  ;;  %v3257_v11 = vld [vmem:[#allocation7 + $0x220] sm:$0xf] }
  0xe3   :  { %2464 = vmatpush.bf16.msrb.mxu2 %v3926_v22  ;;  %2477 = vmatpush.bf16.msrb.mxu3 %v4118_v23  ;;  %v3395_v22 = vld [vmem:[#allocation7 + $0x350] sm:$0xf0]  ;;  %v4346_v23 = vld [vmem:[#allocation7 + $0x4bc] sm:$0xf] }
  0xe5   :  { %2441 = vmatpush.bf16.msrb.mxu0 %v3470_v43  ;;  %2454 = vmatpush.bf16.msrb.mxu1 %v3662_v44  ;;  %v4338_v43 = vld [vmem:[#allocation7 + $0x474] sm:$0xf0]  ;;  %v3737_v44 = vld [vmem:[#allocation7 + $0x5e0] sm:$0xf] }
  0xe6   :  { %v3546_v56 = vor.u32 %v4338_v43, %v3545_v40  ;;  %v4362_v40 = vld [vmem:[#allocation7 + $0x534] sm:$0xf0]  ;;  %v3041_v43 = vld [vmem:[#allocation7 + $0x70] sm:$0xf] }
  0xe7   :  { %2465 = vmatpush.bf16.msrb.mxu2 %v3902_v5  ;;  %2478 = vmatpush.bf16.msrb.mxu3 %v4094_v10  ;;  %v3398_v5 = vor.u32 %v4298_v20, %v3395_v22  ;;  %v3590_v10 = vor.u32 %v4346_v23, %v3587_v55  ;;  %v4278_v20 = vld [vmem:[#allocation7 + $0x294] sm:$0xf0]  ;;  %v3689_v23 = vld [vmem:[#allocation7 + $0x580] sm:$0xf] }
  0xe8   :  { %v4326_v22 = vld [vmem:[#allocation7 + $0x414] sm:$0xf0] }
  0xe9   :  { %2442 = vmatpush.bf16.msrb.mxu0 %v3446_v57  ;;  %2455 = vmatpush.bf16.msrb.mxu1 %v3638_v58  ;;  %v2187_v21 = vpop.f32.mrf.mxu0  ;;  %v2200_v60 = vpop.f32.mrf.mxu1  ;;  %v3738_v57 = vor.u32 %v4386_v47, %v3737_v44  ;;  %v3329_v58 = vld [vmem:[#allocation7 + $0x2b0] sm:$0xf]  ;;  %v4374_v55 = vld [vmem:[#allocation7 + $0x594] sm:$0xf0]  ;;  %v4212_v44 = vld [vmem:[#allocation7 + $0x84] sm:$0xf0] }
  0xea   :  { %v4997_v28 = vadd.f32 %v2200_v60, %v2187_v21  ;;  %v3330_v16 = vor.u32 %v4284_v59, %v3329_v58  ;;  %v3497_v21 = vld [vmem:[#allocation7 + $0x400] sm:$0xf]  ;;  %v3114_v60 = vor.u32 %v4230_v18, %v3113_v17  ;;  %v3690_v3 = vor.u32 %v4374_v55, %v3689_v23  ;;  %v3185_v23 = vld [vmem:[#allocation7 + $0x190] sm:$0xf]  ;;  %v4248_v55 = vld [vmem:[#allocation7 + $0x1a4] sm:$0xf0] }
  0xeb   :  { %2466 = vmatpush.bf16.msrb.mxu2 %v3878_v24  ;;  %2479 = vmatpush.bf16.msrb.mxu3 %v4070_v35  ;;  %v4290_v24 = vld [vmem:[#allocation7 + $0x2f4] sm:$0xf0]  ;;  %v4436_v35 = vld [vmem:[#allocation7 + $0x78c] sm:$0xf]  ;;  %v3498_v27 = vor.u32 %v4326_v22, %v3497_v21  ;;  %v3042_v58 = vor.u32 %v4212_v44, %v3041_v43  ;;  %v3401_v17 = vld [vmem:[#allocation7 + $0x340] sm:$0xf] }
  0xec   :  { %v3354_v50 = vor.u32 %v4290_v24, %v3353_v12  ;;  %v3950_v36 = vor.u32 %v4436_v35, %v3947_v37  ;;  %v4266_v12 = vld [vmem:[#allocation7 + $0x234] sm:$0xf0]  ;;  %v3449_v24 = vld [vmem:[#allocation7 + $0x3a0] sm:$0xf]  ;;  %v4200_v22 = vld [vmem:[#allocation7 + $0x24] sm:$0xf0] }
  0xed   :  { %2443 = vmatpush.bf16.msrb.mxu0 %v3422_v7  ;;  %2456 = vmatpush.bf16.msrb.mxu1 %v3614_v8  ;;  %v3305_v8 = vld [vmem:[#allocation7 + $0x280] sm:$0xf]  ;;  %v4314_v35 = vld [vmem:[#allocation7 + $0x3b4] sm:$0xf0]  ;;  %v4097_v43 = vld [vmem:[#allocation7 + $0x8b0] sm:$0xf] }
  0xee   :  { %v3641_v37 = vld [vmem:[#allocation7 + $0x520] sm:$0xf]  ;;  %v3450_v47 = vor.u32 %v4314_v35, %v3449_v24  ;;  %v4476_v44 = vld [vmem:[#allocation7 + $0x8c4] sm:$0xf0] }
  0xef   :  { %2467 = vmatpush.bf16.msrb.mxu2 %v3854_v52  ;;  %2480 = vmatpush.bf16.msrb.mxu3 %v4046_v53  ;;  %v3758_v53 = vor.u32 %v4388_v30, %v3755_v31  ;;  %v3282_v30 = vor.u32 %v4272_v13, %v3281_v4  ;;  %v3065_v31 = vld [vmem:[#allocation7 + $0xa0] sm:$0xf]  ;;  %v4434_v13 = vld [vmem:[#allocation7 + $0x774] sm:$0xf0] }
  0xf0   :  { %v3929_v4 = vld [vmem:[#allocation7 + $0x760] sm:$0xf] }
  0xf1   :  { %2444 = vmatpush.bf16.msrb.mxu0 %v3398_v5  ;;  %2457 = vmatpush.bf16.msrb.mxu1 %v3590_v10  ;;  %v2189_v51 = vpop.f32.mrf.mxu0  ;;  %v2202_v52 = vpop.f32.mrf.mxu1  ;;  %v3473_v5 = vld [vmem:[#allocation7 + $0x3d0] sm:$0xf]  ;;  %v4320_v10 = vld [vmem:[#allocation7 + $0x3e4] sm:$0xf0]  ;;  %v3930_v24 = vor.u32 %v4434_v13, %v3929_v4  ;;  %v3833_v13 = vld [vmem:[#allocation7 + $0x6a0] sm:$0xf] }
  0xf2   :  { %v4260_v51 = vld [vmem:[#allocation7 + $0x204] sm:$0xf0]  ;;  %v3425_v52 = vld [vmem:[#allocation7 + $0x370] sm:$0xf] }
  0xf3   :  { %2468 = vmatpush.bf16.msrb.mxu2 %v3830_v2  ;;  %2481 = vmatpush.bf16.msrb.mxu3 %v4022_v6  ;;  %v4380_v2 = vld [vmem:[#allocation7 + $0x5c4] sm:$0xf0]  ;;  %v3138_v6 = vor.u32 %v4236_v54, %v3137_v49 }
  0xf4   :  { %v3714_v7 = vor.u32 %v4380_v2, %v3713_v1  ;;  %v4356_v49 = vld [vmem:[#allocation7 + $0x504] sm:$0xf0] }
  0xf5   :  { %2445 = vmatpush.bf16.msrb.mxu0 %v3374_v41  ;;  %2458 = vmatpush.bf16.msrb.mxu1 %v3566_v42  ;;  %v3066_v41 = vor.u32 %v4218_v32, %v3065_v31  ;;  %v3258_v42 = vor.u32 %v4266_v12, %v3257_v11  ;;  %v3186_v31 = vor.u32 %v4248_v55, %v3185_v23  ;;  %v3163_v32 = vld [vmem:[#allocation7 + $0x178] sm:$0xf0]  ;;  %v4049_v55 = vld [vmem:[#allocation7 + $0x850] sm:$0xf] }
  0xf7   :  { %2469 = vmatpush.bf16.msrb.mxu2 %v3806_v9  ;;  %2482 = vmatpush.bf16.msrb.mxu3 %v3998_v25  ;;  %v3306_v9 = vor.u32 %v4278_v20, %v3305_v8  ;;  %v3089_v25 = vld [vmem:[#allocation7 + $0xd0] sm:$0xf]  ;;  %v4350_v8 = vld [vmem:[#allocation7 + $0x4d4] sm:$0xf0] }
  0xf8   :  { %2446 = vmatmul.bf16.vlgmr.msrb.gmra.mxu0 %v4968_v61  ;;  %2459 = vmatmul.bf16.vlgmr.msrb.gmra.mxu1 %v4970_v62  ;;  %v3090_v29 = vor.u32 %v4224_v26, %v3089_v25  ;;  %v2993_v20 = vld [vmem:[#allocation7 + $0x10] sm:$0xf]  ;;  %v4296_v26 = vld [vmem:[#allocation7 + $0x324] sm:$0xf0] }
  0xf9   :  { %2490 = vmatpush.bf16.msra.mxu0 %v3162_v48  ;;  %2503 = vmatpush.bf16.msra.mxu1 %v3354_v50  ;;  %v3642_v48 = vor.u32 %v4362_v40, %v3641_v37  ;;  %v3233_v50 = vld [vmem:[#allocation7 + $0x1f0] sm:$0xf]  ;;  %v4428_v40 = vld [vmem:[#allocation7 + $0x744] sm:$0xf0] }
  0xfa   :  { %v3234_v59 = vor.u32 %v4260_v51, %v3233_v50  ;;  %v3377_v25 = vld [vmem:[#allocation7 + $0x310] sm:$0xf]  ;;  %v4281_v50 = vld [vmem:[#allocation7 + $0x2b4] sm:$0xf]  ;;  %v3331_v51 = vld [vmem:[#allocation7 + $0x2c8] sm:$0xf0] }
  0xfb   :  { %2470 = vmatpush.bf16.msrb.mxu2 %v3782_v33  ;;  %2483 = vmatpush.bf16.msrb.mxu3 %v3974_v34  ;;  %v3474_v33 = vor.u32 %v4320_v10, %v3473_v5  ;;  %v3666_v34 = vor.u32 %v4368_v15, %v3665_v14  ;;  %v4121_v14 = vld [vmem:[#allocation7 + $0x8e0] sm:$0xf]  ;;  %v4482_v15 = vld [vmem:[#allocation7 + $0x8f4] sm:$0xf0]  ;;  %v3378_v11 = vor.u32 %v4296_v26, %v3377_v25  ;;  %v3905_v37 = vld [vmem:[#allocation7 + $0x730] sm:$0xf] }
  0xfc   :  { %v4122_v35 = vor.u32 %v4482_v15, %v4121_v14  ;;  %v3091_v26 = vld [vmem:[#allocation7 + $0xe8] sm:$0xf0] }
  0xfd   :  { %2491 = vmatpush.bf16.msra.mxu0 %v3138_v6  ;;  %2504 = vmatpush.bf16.msra.mxu1 %v3330_v16  ;;  %v3209_v6 = vld [vmem:[#allocation7 + $0x1c0] sm:$0xf]  ;;  %v4254_v16 = vld [vmem:[#allocation7 + $0x1d4] sm:$0xf0] }
  0xfe   :  { %v3210_v21 = vor.u32 %v4254_v16, %v3209_v6  ;;  %v4275_v6 = vld [vmem:[#allocation7 + $0x284] sm:$0xf]  ;;  %v3307_v16 = vld [vmem:[#allocation7 + $0x298] sm:$0xf0] }
  0xff   :  { %2471 = vmatpush.bf16.msrb.mxu2 %v3758_v53  ;;  %2484 = vmatpush.bf16.msrb.mxu3 %v3950_v36  ;;  %v4308_v53 = vld [vmem:[#allocation7 + $0x384] sm:$0xf0]  ;;  %v3617_v36 = vld [vmem:[#allocation7 + $0x4f0] sm:$0xf]  ;;  %v3310_v23 = vor.u32 %v4275_v6, %v3307_v16  ;;  %v3019_v6 = vld [vmem:[#allocation7 + $0x58] sm:$0xf0] }
 0x100   :  { %v3426_v1 = vor.u32 %v4308_v53, %v3425_v52  ;;  %v3618_v2 = vor.u32 %v4356_v49, %v3617_v36  ;;  %v3906_v52 = vor.u32 %v4428_v40, %v3905_v37  ;;  %v4098_v53 = vor.u32 %v4476_v44, %v4097_v43  ;;  %v3881_v36 = vld [vmem:[#allocation7 + $0x700] sm:$0xf]  ;;  %v4422_v49 = vld [vmem:[#allocation7 + $0x714] sm:$0xf0]  ;;  %v3809_v40 = vld [vmem:[#allocation7 + $0x670] sm:$0xf] }
 0x101   :  { %2492 = vmatpush.bf16.msra.mxu0 %v3114_v60  ;;  %2505 = vmatpush.bf16.msra.mxu1 %v3306_v9  ;;  %v4001_v44 = vld [vmem:[#allocation7 + $0x7f0] sm:$0xf]  ;;  %v4251_v16 = vld [vmem:[#allocation7 + $0x1c4] sm:$0xf] }
 0x102   :  { %2472 = vmatmul.bf16.vlgmr.msrb.gmra.mxu2 %v4979_v38  ;;  %2485 = vmatmul.bf16.vlgmr.msrb.gmra.mxu3 %v4981_v39 }
 0x103   :  { %2516 = vmatpush.bf16.msra.mxu2 %v3546_v56  ;;  %2529 = vmatpush.bf16.msra.mxu3 %v3738_v57 }
 0x105   :  { %2493 = vmatpush.bf16.msra.mxu0 %v3090_v29  ;;  %2506 = vmatpush.bf16.msra.mxu1 %v3282_v30  ;;  %v2213_v54 = vpop.f32.mrf.mxu2  ;;  %v2226_v56 = vpop.f32.mrf.mxu3  ;;  %v4239_v29 = vld [vmem:[#allocation7 + $0x164] sm:$0xf]  ;;  %v2994_v30 = vor.u32 %v4200_v22, %v2993_v20 }
 0x106   :  { %v2214_v57 = vadd.f32 %v2213_v54, %v4997_v28  ;;  %v3018_v28 = vor.u32 %v4206_v0, %v3017_v63  ;;  %v4470_v63 = vld [vmem:[#allocation7 + $0x894] sm:$0xf0]  ;;  %v4227_v0 = vld [vmem:[#allocation7 + $0x104] sm:$0xf] }
 0x107   :  { %2517 = vmatpush.bf16.msra.mxu2 %v3522_v19  ;;  %2530 = vmatpush.bf16.msra.mxu3 %v3714_v7  ;;  %v4302_v19 = vld [vmem:[#allocation7 + $0x354] sm:$0xf0]  ;;  %v3593_v7 = vld [vmem:[#allocation7 + $0x4c0] sm:$0xf] }
 0x108   :  { %v5004_v18 = vadd.f32 %v2226_v56, %v2214_v57  ;;  %v3402_v60 = vor.u32 %v4302_v19, %v3401_v17  ;;  %v3594_v9 = vor.u32 %v4350_v8, %v3593_v7  ;;  %v3882_v8 = vor.u32 %v4422_v49, %v3881_v36  ;;  %v3785_v49 = vld [vmem:[#allocation7 + $0x640] sm:$0xf] }
 0x109   :  { %2494 = vmatpush.bf16.msra.mxu0 %v3066_v41  ;;  %2507 = vmatpush.bf16.msra.mxu1 %v3258_v42  ;;  %v3166_v41 = vor.u32 %v4239_v29, %v3163_v32  ;;  %v4215_v32 = vld [vmem:[#allocation7 + $0xa4] sm:$0xf] }
 0x10b   :  { %2518 = vmatpush.bf16.msra.mxu2 %v3498_v27  ;;  %2531 = vmatpush.bf16.msra.mxu3 %v3690_v3  ;;  %v3569_v27 = vld [vmem:[#allocation7 + $0x490] sm:$0xf]  ;;  %v4344_v3 = vld [vmem:[#allocation7 + $0x4a4] sm:$0xf0] }
 0x10c   :  { %v3570_v12 = vor.u32 %v4344_v3, %v3569_v27  ;;  %v4269_v27 = vld [vmem:[#allocation7 + $0x254] sm:$0xf]  ;;  %v3283_v3 = vld [vmem:[#allocation7 + $0x268] sm:$0xf0] }
 0x10d   :  { %2495 = vmatpush.bf16.msra.mxu0 %v3042_v58  ;;  %2508 = vmatpush.bf16.msra.mxu1 %v3234_v59  ;;  %v2215_v5 = vpop.f32.mrf.mxu2  ;;  %v2228_v10 = vpop.f32.mrf.mxu3  ;;  %v3334_v58 = vor.u32 %v4281_v50, %v3331_v51  ;;  %v4073_v59 = vld [vmem:[#allocation7 + $0x880] sm:$0xf]  ;;  %v3286_v29 = vor.u32 %v4269_v27, %v3283_v3  ;;  %v3043_v50 = vld [vmem:[#allocation7 + $0x88] sm:$0xf0]  ;;  %v4257_v51 = vld [vmem:[#allocation7 + $0x1f4] sm:$0xf] }
 0x10e   :  { %v4074_v20 = vor.u32 %v4470_v63, %v4073_v59  ;;  %v4410_v5 = vld [vmem:[#allocation7 + $0x6b4] sm:$0xf0]  ;;  %v3977_v63 = vld [vmem:[#allocation7 + $0x7c0] sm:$0xf]  ;;  %v2995_v27 = vld [vmem:[#allocation7 + $0x28] sm:$0xf0] }
 0x10f   :  { %2519 = vmatpush.bf16.msra.mxu2 %v3474_v33  ;;  %2532 = vmatpush.bf16.msra.mxu3 %v3666_v34  ;;  %v4287_v33 = vld [vmem:[#allocation7 + $0x2e4] sm:$0xf]  ;;  %v3355_v34 = vld [vmem:[#allocation7 + $0x2f8] sm:$0xf0]  ;;  %v4245_v3 = vld [vmem:[#allocation7 + $0x194] sm:$0xf] }
 0x110   :  { %v3358_v42 = vor.u32 %v4287_v33, %v3355_v34  ;;  %v3067_v33 = vld [vmem:[#allocation7 + $0xb8] sm:$0xf0]  ;;  %v4263_v34 = vld [vmem:[#allocation7 + $0x224] sm:$0xf] }
 0x111   :  { %2496 = vmatpush.bf16.msra.mxu0 %v3018_v28  ;;  %2509 = vmatpush.bf16.msra.mxu1 %v3210_v21  ;;  %v3857_v28 = vld [vmem:[#allocation7 + $0x6d0] sm:$0xf]  ;;  %v4416_v21 = vld [vmem:[#allocation7 + $0x6e4] sm:$0xf0] }
 0x113   :  { %2520 = vmatpush.bf16.msra.mxu2 %v3450_v47  ;;  %2533 = vmatpush.bf16.msra.mxu3 %v3642_v48  ;;  %v4233_v47 = vld [vmem:[#allocation7 + $0x134] sm:$0xf]  ;;  %v3139_v48 = vld [vmem:[#allocation7 + $0x148] sm:$0xf0] }
 0x114   :  { %v3142_v57 = vor.u32 %v4233_v47, %v3139_v48  ;;  %v4452_v47 = vld [vmem:[#allocation7 + $0x804] sm:$0xf0]  ;;  %v4209_v48 = vld [vmem:[#allocation7 + $0x74] sm:$0xf] }
 0x115   :  { %2497 = vmatpush.bf16.msra.mxu0 %v2994_v30  ;;  %2510 = vmatpush.bf16.msra.mxu1 %v3186_v31  ;;  %v2265_v54 = vpop.f32.mrf.mxu2  ;;  %v2278_v56 = vpop.f32.mrf.mxu3  ;;  %v4025_v30 = vld [vmem:[#allocation7 + $0x820] sm:$0xf]  ;;  %v4458_v31 = vld [vmem:[#allocation7 + $0x834] sm:$0xf0]  ;;  %v4002_v36 = vor.u32 %v4452_v47, %v4001_v44  ;;  %v4377_v47 = vld [vmem:[#allocation7 + $0x5b4] sm:$0xf] }
 0x116   :  { %v2239_v17 = vpop.f32.mrf.mxu0  ;;  %v2252_v19 = vpop.f32.mrf.mxu1  ;;  %v4026_v37 = vor.u32 %v4458_v31, %v4025_v30  ;;  %v3931_v31 = vld [vmem:[#allocation7 + $0x778] sm:$0xf0] }
 0x117   :  { %2521 = vmatpush.bf16.msra.mxu2 %v3426_v1  ;;  %2534 = vmatpush.bf16.msra.mxu3 %v3618_v2  ;;  %v5006_v1 = vadd.f32 %v2278_v56, %v2265_v54  ;;  %v3115_v2 = vld [vmem:[#allocation7 + $0x118] sm:$0xf0]  ;;  %v2240_v7 = vadd.f32 %v2239_v17, %v5004_v18  ;;  %v3858_v18 = vor.u32 %v4416_v21, %v3857_v28  ;;  %v4398_v54 = vld [vmem:[#allocation7 + $0x654] sm:$0xf0] }
 0x118   :  { %2498 = vmatmul.bf16.vlgmr.msra.gmra.mxu0 %v4954_v45  ;;  %2511 = vmatmul.bf16.vlgmr.msra.gmra.mxu1 %v4956_v46  ;;  %v3118_v22 = vor.u32 %v4227_v0, %v3115_v2  ;;  %v4446_v0 = vld [vmem:[#allocation7 + $0x7d4] sm:$0xf0]  ;;  %v4203_v2 = vld [vmem:[#allocation7 + $0x44] sm:$0xf]  ;;  %v3211_v17 = vld [vmem:[#allocation7 + $0x1d8] sm:$0xf0]  ;;  %v3786_v28 = vor.u32 %v4398_v54, %v3785_v49 }
 0x119   :  { %2542 = vmatpush.bf16.msrb.mxu0 %v3930_v24  ;;  %2555 = vmatpush.bf16.msrb.mxu1 %v4122_v35  ;;  %v5013_v25 = vadd.f32 %v2252_v19, %v2240_v7  ;;  %v3834_v35 = vor.u32 %v4410_v5, %v3833_v13  ;;  %v3978_v21 = vor.u32 %v4446_v0, %v3977_v63  ;;  %v4335_v13 = vld [vmem:[#allocation7 + $0x464] sm:$0xf]  ;;  %v3547_v5 = vld [vmem:[#allocation7 + $0x478] sm:$0xf0]  ;;  %v4099_v49 = vld [vmem:[#allocation7 + $0x8c8] sm:$0xf0] }
 0x11a   :  { %v4371_v0 = vld [vmem:[#allocation7 + $0x584] sm:$0xf] }
 0x11b   :  { %2522 = vmatpush.bf16.msra.mxu2 %v3402_v60  ;;  %2535 = vmatpush.bf16.msra.mxu3 %v3594_v9  ;;  %v4464_v60 = vld [vmem:[#allocation7 + $0x864] sm:$0xf0]  ;;  %v4221_v9 = vld [vmem:[#allocation7 + $0xd4] sm:$0xf] }
 0x11c   :  { %v4050_v4 = vor.u32 %v4464_v60, %v4049_v55  ;;  %v3094_v15 = vor.u32 %v4221_v9, %v3091_v26  ;;  %v4440_v55 = vld [vmem:[#allocation7 + $0x7a4] sm:$0xf0]  ;;  %v3022_v60 = vor.u32 %v4203_v2, %v3019_v6  ;;  %v3214_v9 = vor.u32 %v4251_v16, %v3211_v17  ;;  %v4197_v26 = vld [vmem:[#allocation7 + $0x14] sm:$0xf]  ;;  %v3691_v2 = vld [vmem:[#allocation7 + $0x598] sm:$0xf0] }
 0x11d   :  { %2543 = vmatpush.bf16.msrb.mxu0 %v3906_v52  ;;  %2556 = vmatpush.bf16.msrb.mxu1 %v4098_v53  ;;  %v2267_v10 = vpop.f32.mrf.mxu2  ;;  %v2280_v14 = vpop.f32.mrf.mxu3  ;;  %v3235_v52 = vld [vmem:[#allocation7 + $0x208] sm:$0xf0]  ;;  %v4419_v6 = vld [vmem:[#allocation7 + $0x704] sm:$0xf]  ;;  %v3883_v16 = vld [vmem:[#allocation7 + $0x718] sm:$0xf0] }
 0x11e   :  { %v2254_v24 = vpop.f32.mrf.mxu1  ;;  %v3238_v59 = vor.u32 %v4257_v51, %v3235_v52  ;;  %v4383_v10 = vld [vmem:[#allocation7 + $0x5e4] sm:$0xf] }
 0x11f   :  { %2523 = vmatpush.bf16.msra.mxu2 %v3378_v11  ;;  %2536 = vmatpush.bf16.msra.mxu3 %v3570_v12  ;;  %v3259_v11 = vld [vmem:[#allocation7 + $0x238] sm:$0xf0]  ;;  %v2241_v12 = vpop.f32.mrf.mxu0  ;;  %v4431_v14 = vld [vmem:[#allocation7 + $0x764] sm:$0xf] }
 0x120   :  { %v3262_v43 = vor.u32 %v4263_v34, %v3259_v11  ;;  %v2998_v34 = vor.u32 %v4197_v26, %v2995_v27  ;;  %v4467_v17 = vld [vmem:[#allocation7 + $0x884] sm:$0xf]  ;;  %v4461_v26 = vld [vmem:[#allocation7 + $0x854] sm:$0xf]  ;;  %v4051_v27 = vld [vmem:[#allocation7 + $0x868] sm:$0xf0] }
 0x121   :  { %2544 = vmatpush.bf16.msrb.mxu0 %v3882_v8  ;;  %2557 = vmatpush.bf16.msrb.mxu1 %v4074_v20  ;;  %v3761_v8 = vld [vmem:[#allocation7 + $0x610] sm:$0xf] }
 0x122   :  { %2524 = vmatmul.bf16.vlgmr.msra.gmra.mxu2 %v4968_v61  ;;  %2537 = vmatmul.bf16.vlgmr.msra.gmra.mxu3 %v4970_v62 }
 0x123   :  { %2568 = vmatpush.bf16.msrb.mxu2 %v3166_v41  ;;  %2581 = vmatpush.bf16.msrb.mxu3 %v3358_v42  ;;  %v4404_v41 = vld [vmem:[#allocation7 + $0x684] sm:$0xf0]  ;;  %v3070_v42 = vor.u32 %v4215_v32, %v3067_v33  ;;  %v4479_v32 = vld [vmem:[#allocation7 + $0x8e4] sm:$0xf]  ;;  %v4123_v33 = vld [vmem:[#allocation7 + $0x8f8] sm:$0xf0] }
 0x124   :  { %v3810_v53 = vor.u32 %v4404_v41, %v3809_v40  ;;  %v4329_v41 = vld [vmem:[#allocation7 + $0x434] sm:$0xf]  ;;  %v4126_v44 = vor.u32 %v4479_v32, %v4123_v33 }
 0x125   :  { %2545 = vmatpush.bf16.msrb.mxu0 %v3858_v18  ;;  %2558 = vmatpush.bf16.msrb.mxu1 %v4050_v4  ;;  %v2317_v56 = vpop.f32.mrf.mxu2  ;;  %v3187_v4 = vld [vmem:[#allocation7 + $0x1a8] sm:$0xf0] }
 0x126   :  { %v2304_v7 = vpop.f32.mrf.mxu1  ;;  %v3190_v11 = vor.u32 %v4245_v3, %v3187_v4  ;;  %v4311_v3 = vld [vmem:[#allocation7 + $0x3a4] sm:$0xf] }
 0x127   :  { %2569 = vmatpush.bf16.msrb.mxu2 %v3142_v57  ;;  %2582 = vmatpush.bf16.msrb.mxu3 %v3334_v58  ;;  %v2330_v57 = vpop.f32.mrf.mxu3  ;;  %v3046_v58 = vor.u32 %v4209_v48, %v3043_v50  ;;  %v2291_v19 = vpop.f32.mrf.mxu0  ;;  %v3715_v48 = vld [vmem:[#allocation7 + $0x5c8] sm:$0xf0]  ;;  %v4425_v50 = vld [vmem:[#allocation7 + $0x734] sm:$0xf] }
 0x128   :  { %v2292_v20 = vadd.f32 %v2291_v19, %v5006_v1  ;;  %v3739_v1 = vld [vmem:[#allocation7 + $0x5f8] sm:$0xf0] }
 0x129   :  { %2546 = vmatpush.bf16.msrb.mxu0 %v3834_v35  ;;  %2559 = vmatpush.bf16.msrb.mxu1 %v4026_v37  ;;  %v3550_v37 = vor.u32 %v4335_v13, %v3547_v5  ;;  %v3742_v40 = vor.u32 %v4383_v10, %v3739_v1  ;;  %v4075_v19 = vld [vmem:[#allocation7 + $0x898] sm:$0xf0]  ;;  %v4054_v13 = vor.u32 %v4461_v26, %v4051_v27  ;;  %v4359_v5 = vld [vmem:[#allocation7 + $0x524] sm:$0xf]  ;;  %v3955_v26 = vld [vmem:[#allocation7 + $0x7a8] sm:$0xf0] }
 0x12a   :  { %v2305_v18 = vadd.f32 %v2304_v7, %v2292_v20  ;;  %v4317_v20 = vld [vmem:[#allocation7 + $0x3d4] sm:$0xf]  ;;  %v3643_v10 = vld [vmem:[#allocation7 + $0x538] sm:$0xf0]  ;;  %v4407_v1 = vld [vmem:[#allocation7 + $0x6a4] sm:$0xf] }
 0x12b   :  { %2570 = vmatpush.bf16.msrb.mxu2 %v3118_v22  ;;  %2583 = vmatpush.bf16.msrb.mxu3 %v3310_v23  ;;  %v4392_v22 = vld [vmem:[#allocation7 + $0x624] sm:$0xf0]  ;;  %v3953_v23 = vld [vmem:[#allocation7 + $0x790] sm:$0xf] }
 0x12c   :  { %v3954_v30 = vor.u32 %v4440_v55, %v3953_v23  ;;  %v4365_v23 = vld [vmem:[#allocation7 + $0x554] sm:$0xf]  ;;  %v3667_v55 = vld [vmem:[#allocation7 + $0x568] sm:$0xf0] }
 0x12d   :  { %2547 = vmatpush.bf16.msrb.mxu0 %v3810_v53  ;;  %2560 = vmatpush.bf16.msrb.mxu1 %v4002_v36  ;;  %v2319_v12 = vpop.f32.mrf.mxu2  ;;  %v3907_v53 = vld [vmem:[#allocation7 + $0x748] sm:$0xf0]  ;;  %v4473_v36 = vld [vmem:[#allocation7 + $0x8b4] sm:$0xf] }
 0x12e   :  { %v2306_v52 = vpop.f32.mrf.mxu1  ;;  %v4102_v63 = vor.u32 %v4473_v36, %v4099_v49  ;;  %v3427_v12 = vld [vmem:[#allocation7 + $0x388] sm:$0xf0]  ;;  %v4347_v49 = vld [vmem:[#allocation7 + $0x4c4] sm:$0xf] }
 0x12f   :  { %2571 = vmatpush.bf16.msrb.mxu2 %v3094_v15  ;;  %2584 = vmatpush.bf16.msrb.mxu3 %v3286_v29  ;;  %v2318_v15 = vadd.f32 %v2317_v56, %v2305_v18  ;;  %v3762_v29 = vor.u32 %v4392_v22, %v3761_v8  ;;  %v2332_v24 = vpop.f32.mrf.mxu3  ;;  %v2293_v51 = vpop.f32.mrf.mxu0  ;;  %v3718_v56 = vor.u32 %v4377_v47, %v3715_v48  ;;  %v3451_v18 = vld [vmem:[#allocation7 + $0x3b8] sm:$0xf0]  ;;  %v4003_v47 = vld [vmem:[#allocation7 + $0x808] sm:$0xf0] }
 0x130   :  { %v3694_v8 = vor.u32 %v4371_v0, %v3691_v2  ;;  %v4078_v22 = vor.u32 %v4467_v17, %v4075_v19  ;;  %v3454_v33 = vor.u32 %v4311_v3, %v3451_v18  ;;  %v4299_v51 = vld [vmem:[#allocation7 + $0x344] sm:$0xf]  ;;  %v3403_v52 = vld [vmem:[#allocation7 + $0x358] sm:$0xf0] }
 0x131   :  { %2548 = vmatpush.bf16.msrb.mxu0 %v3786_v28  ;;  %2561 = vmatpush.bf16.msrb.mxu1 %v3978_v21  ;;  %v5016_v35 = vadd.f32 %v2330_v57, %v2318_v15  ;;  %v4323_v57 = vld [vmem:[#allocation7 + $0x404] sm:$0xf]  ;;  %v3475_v28 = vld [vmem:[#allocation7 + $0x3e8] sm:$0xf0]  ;;  %v3886_v21 = vor.u32 %v4419_v6, %v3883_v16  ;;  %v3979_v0 = vld [vmem:[#allocation7 + $0x7d8] sm:$0xf0]  ;;  %v3406_v17 = vor.u32 %v4299_v51, %v3403_v52 }
 0x132   :  { %v4455_v15 = vld [vmem:[#allocation7 + $0x824] sm:$0xf] }
 0x133   :  { %2572 = vmatpush.bf16.msrb.mxu2 %v3070_v42  ;;  %2585 = vmatpush.bf16.msrb.mxu3 %v3262_v43  ;;  %v3523_v42 = vld [vmem:[#allocation7 + $0x448] sm:$0xf0]  ;;  %v3934_v43 = vor.u32 %v4431_v14, %v3931_v31  ;;  %v3835_v14 = vld [vmem:[#allocation7 + $0x6b8] sm:$0xf0] }
 0x134   :  { %v3526_v54 = vor.u32 %v4329_v41, %v3523_v42  ;;  %v3838_v24 = vor.u32 %v4407_v1, %v3835_v14  ;;  %v3619_v41 = vld [vmem:[#allocation7 + $0x508] sm:$0xf0]  ;;  %v4401_v42 = vld [vmem:[#allocation7 + $0x674] sm:$0xf] }
 0x135   :  { %2549 = vmatpush.bf16.msrb.mxu0 %v3762_v29  ;;  %2562 = vmatpush.bf16.msrb.mxu1 %v3954_v30  ;;  %v4027_v29 = vld [vmem:[#allocation7 + $0x838] sm:$0xf0] }
 0x136   :  { %v2356_v31 = vpop.f32.mrf.mxu1 }
 0x137   :  { %2573 = vmatpush.bf16.msrb.mxu2 %v3046_v58  ;;  %2586 = vmatpush.bf16.msrb.mxu3 %v3238_v59  ;;  %v3499_v58 = vld [vmem:[#allocation7 + $0x418] sm:$0xf0]  ;;  %v3910_v59 = vor.u32 %v4425_v50, %v3907_v53  ;;  %v2343_v30 = vpop.f32.mrf.mxu0 }
 0x138   :  { %2550 = vmatmul.bf16.vlgmr.msrb.gmra.mxu0 %v4979_v38  ;;  %2563 = vmatmul.bf16.vlgmr.msrb.gmra.mxu1 %v4981_v39  ;;  %v3502_v7 = vor.u32 %v4323_v57, %v3499_v58  ;;  %v2357_v32 = vadd.f32 %v2356_v31, %v2343_v30 }
 0x139   :  { %2594 = vmatpush.bf16.msra.mxu0 %v3550_v37  ;;  %2607 = vmatpush.bf16.msra.mxu1 %v3742_v40  ;;  %v4030_v37 = vor.u32 %v4455_v15, %v4027_v29  ;;  %v4353_v40 = vld [vmem:[#allocation7 + $0x4f4] sm:$0xf] }
 0x13a   :  { %v3622_v50 = vor.u32 %v4353_v40, %v3619_v41 }
 0x13b   :  { %2574 = vmatpush.bf16.msrb.mxu2 %v3022_v60  ;;  %2587 = vmatpush.bf16.msrb.mxu3 %v3214_v9  ;;  %v4413_v60 = vld [vmem:[#allocation7 + $0x6d4] sm:$0xf]  ;;  %v3859_v9 = vld [vmem:[#allocation7 + $0x6e8] sm:$0xf0] }
 0x13c   :  { %v3862_v4 = vor.u32 %v4413_v60, %v3859_v9  ;;  %v3763_v60 = vld [vmem:[#allocation7 + $0x628] sm:$0xf0]  ;;  %v4437_v9 = vld [vmem:[#allocation7 + $0x794] sm:$0xf] }
 0x13d   :  { %2595 = vmatpush.bf16.msra.mxu0 %v3526_v54  ;;  %2608 = vmatpush.bf16.msra.mxu1 %v3718_v56  ;;  %v3595_v54 = vld [vmem:[#allocation7 + $0x4d8] sm:$0xf0]  ;;  %v4395_v56 = vld [vmem:[#allocation7 + $0x644] sm:$0xf]  ;;  %v3958_v3 = vor.u32 %v4437_v9, %v3955_v26 }
 0x13e   :  { %v2358_v6 = vpop.f32.mrf.mxu1  ;;  %v3598_v19 = vor.u32 %v4347_v49, %v3595_v54 }
 0x13f   :  { %2575 = vmatpush.bf16.msrb.mxu2 %v2998_v34  ;;  %2588 = vmatpush.bf16.msrb.mxu3 %v3190_v11  ;;  %v3646_v34 = vor.u32 %v4359_v5, %v3643_v10  ;;  %v4305_v11 = vld [vmem:[#allocation7 + $0x374] sm:$0xf]  ;;  %v2345_v2 = vpop.f32.mrf.mxu0 }
 0x140   :  { %v3430_v48 = vor.u32 %v4305_v11, %v3427_v12  ;;  %v4489_v12 = vld [vmem:[%s5106_s6 + $0x30] sm:$0xff]  ;;  %v4486_v2 = vld [vmem:[%s5106_s6 + $0x18] sm:$0xff] }
 0x141   :  { %2596 = vmatpush.bf16.msra.mxu0 %v3502_v7  ;;  %2609 = vmatpush.bf16.msra.mxu1 %v3694_v8  ;;  %v4293_v7 = vld [vmem:[#allocation7 + $0x314] sm:$0xf]  ;;  %v3379_v8 = vld [vmem:[#allocation7 + $0x328] sm:$0xf0] }
 0x142   :  { %2576 = vmatmul.bf16.vlgmr.msrb.gmra.mxu2 %v4954_v45  ;;  %2589 = vmatmul.bf16.vlgmr.msrb.gmra.mxu3 %v4956_v46  ;;  %v3478_v45 = vor.u32 %v4317_v20, %v3475_v28  ;;  %v3670_v46 = vor.u32 %v4365_v23, %v3667_v55  ;;  %v3571_v23 = vld [vmem:[#allocation7 + $0x4a8] sm:$0xf0]  ;;  %v4389_v55 = vld [vmem:[#allocation7 + $0x614] sm:$0xf]  ;;  %v3382_v27 = vor.u32 %v4293_v7, %v3379_v8 }
 0x143   :  { %2620 = vmatpush.bf16.msra.mxu2 %v3934_v43  ;;  %2633 = vmatpush.bf16.msra.mxu3 %v4126_v44  ;;  %v3811_v43 = vld [vmem:[#allocation7 + $0x688] sm:$0xf0]  ;;  %v4449_v44 = vld [vmem:[#allocation7 + $0x7f4] sm:$0xf] }
 0x144   :  { %v3814_v53 = vor.u32 %v4401_v42, %v3811_v43  ;;  %v4006_v36 = vor.u32 %v4449_v44, %v4003_v47  ;;  %v4488_v43 = vld [vmem:[%s5106_s6 + $0x28] sm:$0xff] }
 0x145   :  { %2597 = vmatpush.bf16.msra.mxu0 %v3478_v45  ;;  %2610 = vmatpush.bf16.msra.mxu1 %v3670_v46  ;;  %v2369_v57 = vpop.f32.mrf.mxu2  ;;  %v2382_v58 = vpop.f32.mrf.mxu3  ;;  %v3766_v46 = vor.u32 %v4389_v55, %v3763_v60  ;;  %v4483_v55 = vld [vmem:[%s5106_s6] sm:$0xff]  ;;  %v4498_v60 = vld [vmem:[%s5106_s6 + $0x78] sm:$0xff] }
 0x146   :  { %v2370_v16 = vadd.f32 %v2369_v57, %v2357_v32 }
 0x147   :  { %2621 = vmatpush.bf16.msra.mxu2 %v3910_v59  ;;  %2634 = vmatpush.bf16.msra.mxu3 %v4102_v63  ;;  %v3787_v59 = vld [vmem:[#allocation7 + $0x658] sm:$0xf0]  ;;  %v4443_v63 = vld [vmem:[#allocation7 + $0x7c4] sm:$0xf] }
 0x148   :  { %v2383_v20 = vadd.f32 %v2382_v58, %v2370_v16  ;;  %v3790_v28 = vor.u32 %v4395_v56, %v3787_v59  ;;  %v4487_v56 = vld [vmem:[%s5106_s6 + $0x20] sm:$0xff] }
 0x149   :  { %2598 = vmatpush.bf16.msra.mxu0 %v3454_v33  ;;  %2611 = vmatpush.bf16.msra.mxu1 %v3646_v34 }
 0x14b   :  { %2622 = vmatpush.bf16.msra.mxu2 %v3886_v21  ;;  %2635 = vmatpush.bf16.msra.mxu3 %v4078_v22  ;;  %v3982_v21 = vor.u32 %v4443_v63, %v3979_v0  ;;  %v4341_v22 = vld [vmem:[#allocation7 + $0x494] sm:$0xf] }
 0x14c   :  { %v3574_v45 = vor.u32 %v4341_v22, %v3571_v23 }
 0x14d   :  { %2599 = vmatpush.bf16.msra.mxu0 %v3430_v48  ;;  %2612 = vmatpush.bf16.msra.mxu1 %v3622_v50  ;;  %v2371_v18 = vpop.f32.mrf.mxu2 }
 0x14f   :  { %2623 = vmatpush.bf16.msra.mxu2 %v3862_v4  ;;  %2636 = vmatpush.bf16.msra.mxu3 %v4054_v13  ;;  %v2384_v4 = vpop.f32.mrf.mxu3 }
 0x151   :  { %2600 = vmatpush.bf16.msra.mxu0 %v3406_v17  ;;  %2613 = vmatpush.bf16.msra.mxu1 %v3598_v19  ;;  %v4485_v19 = vld [vmem:[%s5106_s6 + $0x10] sm:$0xff] }
 0x153   :  { %2624 = vmatpush.bf16.msra.mxu2 %v3838_v24  ;;  %2637 = vmatpush.bf16.msra.mxu3 %v4030_v37 }
 0x155   :  { %2601 = vmatpush.bf16.msra.mxu0 %v3382_v27  ;;  %2614 = vmatpush.bf16.msra.mxu1 %v3574_v45  ;;  %v2395_v13 = vpop.f32.mrf.mxu0  ;;  %v2408_v5 = vpop.f32.mrf.mxu1  ;;  %v4497_v45 = vld [vmem:[%s5106_s6 + $0x70] sm:$0xff] }
 0x156   :  { %v2396_v10 = vadd.f32 %v2395_v13, %v2383_v20  ;;  %v4484_v20 = vld [vmem:[%s5106_s6 + $0x8] sm:$0xff] }
 0x157   :  { %2625 = vmatpush.bf16.msra.mxu2 %v3814_v53  ;;  %2638 = vmatpush.bf16.msra.mxu3 %v4006_v36 }
 0x158   :  { %2602 = vmatmul.bf16.vlgmr.msra.gmra.mxu0 %v4968_v61  ;;  %2615 = vmatmul.bf16.vlgmr.msra.gmra.mxu1 %v4970_v62  ;;  %v2409_v1 = vadd.f32 %v2408_v5, %v2396_v10  ;;  %v4490_v62 = vld [vmem:[%s5106_s6 + $0x38] sm:$0xff] }
 0x159   :  { %2894 = vmatpush.bf16.msrb.mxu0 %v4490_v62  ;;  %2907 = vmatpush.bf16.msrb.mxu1 %v4498_v60 }
 0x15b   :  { %2626 = vmatpush.bf16.msra.mxu2 %v3790_v28  ;;  %2639 = vmatpush.bf16.msra.mxu3 %v3982_v21 }
 0x15d   :  { %v2397_v30 = vpop.f32.mrf.mxu0  ;;  %v2410_v31 = vpop.f32.mrf.mxu1  ;;  %2895 = vmatpush.bf16.msrb.mxu0 %v4489_v12  ;;  %2908 = vmatpush.bf16.msrb.mxu1 %v4497_v45 }
 0x15e   :  { %v5070_v30 = vld [vmem:[#allocation11] sm:$0x3] }
 0x15f   :  { %2627 = vmatpush.bf16.msra.mxu2 %v3766_v46  ;;  %2640 = vmatpush.bf16.msra.mxu3 %v3958_v3 }
 0x161   :  { %2896 = vmatpush.bf16.msrb.mxu0 %v4488_v43 }
 0x162   :  { %2628 = vmatmul.bf16.vlgmr.msra.gmra.mxu2 %v4979_v38  ;;  %2641 = vmatmul.bf16.vlgmr.msra.gmra.mxu3 %v4981_v39  ;;  %v5029_v39 = vld [vmem:[#allocation8] sm:$0xf] }
 0x163   :  { %v2648_v44 = vperm.slane %v5029_v39, 0  ;;  %v2650_v53 = vperm.slane %v5029_v39, 2  ;;  %v2649_v28 = vperm.slane %v5029_v39, 1  ;;  %v2651_v13 = vperm.slane %v5029_v39, 3 }
 0x164   :  { %v2746_v39 = vperm.slane %v5070_v30, 0 }
 0x165   :  { %v2421_v14 = vpop.f32.mrf.mxu2  ;;  %v2434_v15 = vpop.f32.mrf.mxu3  ;;  %v2656_v48 = vadd.f32 %v2648_v44, %v5013_v25  ;;  %v2658_v36 = vadd.f32 %v2650_v53, %v2409_v1  ;;  %2897 = vmatpush.bf16.msrb.mxu0 %v4487_v56  ;;  %v2657_v26 = vadd.f32 %v2649_v28, %v5016_v35  ;;  %v4492_v28 = vld [vmem:[%s5106_s6 + $0x48] sm:$0xff] }
 0x166   :  { %v2435_v29 = vadd.f32 %v2434_v15, %v2421_v14 }
 0x167   :  { %v4127_v52 = vmul.f32 -1.442695, %v2656_v48  ;;  %v4129_v49 = vmul.f32 -1.442695, %v2658_v36  ;;  %v4128_v18 = vmul.f32 -1.442695, %v2657_v26 }
 0x169   :  { %4510 = vpow2.f32 %v4127_v52  ;;  %2898 = vmatpush.bf16.msrb.mxu0 %v4486_v2 }
 0x16a   :  { %4512 = vpow2.f32 %v4129_v49 }
 0x16d   :  { %v2423_v32 = vpop.f32.mrf.mxu2  ;;  %v2436_v33 = vpop.f32.mrf.mxu3  ;;  %2899 = vmatpush.bf16.msrb.mxu0 %v4485_v19 }
 0x16f   :  { %v4511_v54 = vpop.eup %4510 }
 0x170   :  { %v2672_v57 = vadd.f32 1.0, %v4511_v54  ;;  %v4513_v25 = vpop.eup %4512 }
 0x171   :  { %v5046_v17 = vadd.f32 1.0, %v4513_v25  ;;  %2900 = vmatpush.bf16.msrb.mxu0 %v4484_v20 }
 0x172   :  { %4514 = vrcp.f32 %v2672_v57  ;;  %vm2681_vm5 = vweird.f32 %v2672_v57  ;;  %v2687_v35 = vand.u32 2147483648, %v2672_v57  ;;  %v2685_v14 = vand.u32 2147483647, %v2672_v57 }
 0x173   :  { %4516 = vrcp.f32 %v5046_v17  ;;  %vm2711_vm9 = vweird.f32 %v5046_v17  ;;  %v2717_v44 = vand.u32 2147483648, %v5046_v17  ;;  %v2715_v48 = vand.u32 2147483647, %v5046_v17 }
 0x174   :  { %4518 = vpow2.f32 %v4128_v18  ;;  %vm2686_vm8 = vcmp.eq.f32.partialorder %v2685_v14, 8.507059e+37 }
 0x175   :  { %v2447_v34 = vpop.f32.mrf.mxu0  ;;  %v2460_v11 = vpop.f32.mrf.mxu1  ;;  %2901 = vmatpush.bf16.msrb.mxu0 %v4483_v55  ;;  %v2718_v54 = vor.u32 1.1754944e-38, %v2717_v44  ;;  %vm2716_vm12 = vcmp.eq.f32.partialorder %v2715_v48, 8.507059e+37 }
 0x176   :  { %v2448_v61 = vadd.f32 %v2447_v34, %v2435_v29  ;;  %v5068_v29 = vld [vmem:[#allocation10] sm:$0x3]  ;;  %v2688_v34 = vor.u32 1.1754944e-38, %v2687_v35 }
 0x178   :  { %v2461_v38 = vadd.f32 %v2460_v11, %v2448_v61  ;;  %v4515_v7 = vpop.eup %4514  ;;  %v4496_v61 = vld [vmem:[%s5106_s6 + $0x68] sm:$0xff] }
 0x179   :  { %v2677_v8 = vmul.f32 %v4515_v7, %v2672_v57  ;;  %v4517_v9 = vpop.eup %4516  ;;  %vm2682_vm6 = vweird.f32 %v4515_v7  ;;  %2909 = vmatpush.bf16.msrb.mxu1 %v4496_v61 }
 0x17a   :  { %v2707_v3 = vmul.f32 %v4517_v9, %v5046_v17  ;;  %vm2683_vm7 = vmor %vm2681_vm5, %vm2682_vm6  ;;  %vm2712_vm10 = vweird.f32 %v4517_v9  ;;  %vm2924_vm5 = vcmask 517120   ;;  %vm2932_vm6 = vcmask 519170  }
 0x17b   :  { %v2678_v23 = vsub.f32 1.0, %v2677_v8  ;;  %vm2713_vm11 = vmor %vm2711_vm9, %vm2712_vm10  ;;  %v4493_v8 = vld [vmem:[%s5106_s6 + $0x50] sm:$0xff] }
 0x17c   :  { %v2708_v10 = vsub.f32 1.0, %v2707_v3 }
 0x17d   :  { %v2449_v41 = vpop.f32.mrf.mxu0  ;;  %v2462_v42 = vpop.f32.mrf.mxu1  ;;  %v2679_v46 = vmul.f32 %v4515_v7, %v2678_v23  ;;  %v4491_v23 = vld [vmem:[%s5106_s6 + $0x40] sm:$0xff] }
 0x17e   :  { %v2709_v11 = vmul.f32 %v4517_v9, %v2708_v10 }
 0x17f   :  { %v2680_v5 = vadd.f32 %v4515_v7, %v2679_v46 }
 0x180   :  { %v2710_v41 = vadd.f32 %v4517_v9, %v2709_v11 }
 0x181   :  { %v2684_v31 = vsel %vm2683_vm7, %v4515_v7, %v2680_v5 }
 0x182   :  { %v2714_v49 = vsel %vm2713_vm11, %v4517_v9, %v2710_v41 }
 0x183   :  { %v2719_v56 = vsel %vm2716_vm12, %v2718_v54, %v2714_v49 }
 0x185   :  { %v2473_v24 = vpop.f32.mrf.mxu2  ;;  %v2486_v37 = vpop.f32.mrf.mxu3 }
 0x186   :  { %v2474_v40 = vadd.f32 %v2473_v24, %v2461_v38  ;;  %v2738_v38 = vperm.slane %v5068_v29, 0  ;;  %v2689_v24 = vsel %vm2686_vm8, %v2688_v34, %v2684_v31  ;;  %v2747_v31 = vperm.slane %v5070_v30, 1 }
 0x187   :  { %v2750_v43 = vmul.f32 %v2746_v39, %v2689_v24 }
 0x188   :  { %v2487_v47 = vadd.f32 %v2486_v37, %v2474_v40  ;;  %v4519_v37 = vpop.eup %4518 }
 0x18a   :  { %v2659_v15 = vadd.f32 %v2651_v13, %v2487_v47  ;;  %v2673_v47 = vadd.f32 1.0, %v4519_v37 }
 0x18c   :  { %v4130_v12 = vmul.f32 -1.442695, %v2659_v15  ;;  %v2702_v3 = vand.u32 2147483648, %v2673_v47  ;;  %vm2696_vm14 = vweird.f32 %v2673_v47  ;;  %v2700_v18 = vand.u32 2147483647, %v2673_v47 }
 0x18d   :  { %v2475_v50 = vpop.f32.mrf.mxu2  ;;  %v2488_v51 = vpop.f32.mrf.mxu3  ;;  %v2739_v15 = vperm.slane %v5068_v29, 1 }
 0x18e   :  { %4520 = vpow2.f32 %v4130_v12  ;;  %v2703_v35 = vor.u32 1.1754944e-38, %v2702_v3  ;;  %vm2701_vm0 = vcmp.eq.f32.partialorder %v2700_v18, 8.507059e+37 }
 0x194   :  { %v4521_v57 = vpop.eup %4520 }
 0x195   :  { %v2499_v58 = vpop.f32.mrf.mxu0  ;;  %v2512_v59 = vpop.f32.mrf.mxu1 }
 0x196   :  { %v2513_v27 = vadd.f32 %v2512_v59, %v2499_v58  ;;  %v4495_v58 = vld [vmem:[%s5106_s6 + $0x60] sm:$0xff]  ;;  %v2756_v59 = vsub.f32 1.0, %v2719_v56 }
 0x197   :  { %2910 = vmatpush.bf16.msrb.mxu1 %v4495_v58 }
 0x19d   :  { %v2501_v6 = vpop.f32.mrf.mxu0  ;;  %v2514_v16 = vpop.f32.mrf.mxu1 }
 0x19e   :  { %v4494_v6 = vld [vmem:[%s5106_s6 + $0x58] sm:$0xff] }
 0x19f   :  { %2911 = vmatpush.bf16.msrb.mxu1 %v4494_v6 }
 0x1a3   :  { %2912 = vmatpush.bf16.msrb.mxu1 %v4493_v8 }
 0x1a5   :  { %v2525_v63 = vpop.f32.mrf.mxu2  ;;  %v2538_v0 = vpop.f32.mrf.mxu3 }
 0x1a6   :  { %v2526_v4 = vadd.f32 %v2525_v63, %v2513_v27  ;;  %v2675_v63 = vadd.f32 1.0, %v4521_v57 }
 0x1a7   :  { %2913 = vmatpush.bf16.msrb.mxu1 %v4492_v28 }
 0x1a8   :  { %v2539_v1 = vadd.f32 %v2538_v0, %v2526_v4  ;;  %v2732_v39 = vand.u32 2147483648, %v2675_v63  ;;  %vm2726_vm2 = vweird.f32 %v2675_v63  ;;  %v2730_v12 = vand.u32 2147483647, %v2675_v63 }
 0x1aa   :  { %v2733_v29 = vor.u32 1.1754944e-38, %v2732_v39  ;;  %vm2731_vm4 = vcmp.eq.f32.partialorder %v2730_v12, 8.507059e+37 }
 0x1ab   :  { %2914 = vmatpush.bf16.msrb.mxu1 %v4491_v23 }
 0x1ad   :  { %v2527_v21 = vpop.f32.mrf.mxu2  ;;  %v2540_v22 = vpop.f32.mrf.mxu3 }
 0x1b5   :  { %v2551_v32 = vpop.f32.mrf.mxu0  ;;  %v2564_v33 = vpop.f32.mrf.mxu1 }
 0x1b6   :  { %v2552_v62 = vadd.f32 %v2551_v32, %v2539_v1 }
 0x1b8   :  { %v2565_v40 = vadd.f32 %v2564_v33, %v2552_v62 }
 0x1ba   :  { %v2742_v42 = vadd.f32 %v2738_v38, %v2565_v40 }
 0x1bc   :  { %v2752_v50 = vadd.f32 %v2750_v43, %v2742_v42 }
 0x1bd   :  { %v2553_v53 = vpop.f32.mrf.mxu0  ;;  %v2566_v36 = vpop.f32.mrf.mxu1 }
 0x1be   :  { %4522 = vtanh.f32 %v2752_v50 }
 0x1bf   :  { %4524 = vrcp.f32 %v2673_v47 }
 0x1c0   :  { %4526 = vrcp.f32 %v2675_v63 }
 0x1c4   :  { %v4523_v25 = vpop.eup %4522 }
 0x1c5   :  { %v2577_v51 = vpop.f32.mrf.mxu2  ;;  %v2590_v52 = vpop.f32.mrf.mxu3  ;;  %v2758_v17 = vmul.f32 %v4523_v25, %v2756_v59 }
 0x1c6   :  { %v4525_v16 = vpop.eup %4524  ;;  %v2591_v60 = vadd.f32 %v2590_v52, %v2577_v51  ;;  %v4509_v51 = vld [vmem:[#allocation13] ss:$0 sm:$0xff] }
 0x1c7   :  { %v2760_v19 = vpack.c.bf16 %v2758_v17, %v2758_v17  ;;  %v2692_v7 = vmul.f32 %v4525_v16, %v2673_v47  ;;  %v4527_v21 = vpop.eup %4526  ;;  %vm2697_vm13 = vweird.f32 %v4525_v16 }
 0x1c8   :  { %v2722_v55 = vmul.f32 %v4527_v21, %v2675_v63  ;;  %vm2698_vm15 = vmor %vm2696_vm14, %vm2697_vm13  ;;  %vm2727_vm1 = vweird.f32 %v4527_v21  ;;  %vm2965_vm13 = vcmask 1024  }
 0x1c9   :  { %2902 = vmatmul.bf16.vlgmr.msrb.gmra.mxu0 %v2760_v19  ;;  %v2693_v20 = vsub.f32 1.0, %v2692_v7  ;;  %vm2728_vm3 = vmor %vm2726_vm2, %vm2727_vm1 }
 0x1ca   :  { %v2723_v46 = vsub.f32 1.0, %v2722_v55 }
 0x1cb   :  { %v2694_v22 = vmul.f32 %v4525_v16, %v2693_v20 }
 0x1cc   :  { %v2724_v1 = vmul.f32 %v4527_v21, %v2723_v46 }
 0x1cd   :  { %v2579_v0 = vpop.f32.mrf.mxu2  ;;  %v2592_v2 = vpop.f32.mrf.mxu3  ;;  %v2695_v45 = vadd.f32 %v4525_v16, %v2694_v22 }
 0x1ce   :  { %v2725_v61 = vadd.f32 %v4527_v21, %v2724_v1 }
 0x1cf   :  { %v2699_v13 = vsel %vm2698_vm15, %v4525_v16, %v2695_v45 }
 0x1d0   :  { %v2704_v34 = vsel %vm2701_vm0, %v2703_v35, %v2699_v13  ;;  %v2729_v41 = vsel %vm2728_vm3, %v4527_v21, %v2725_v61 }
 0x1d1   :  { %v2751_v38 = vmul.f32 %v2747_v31, %v2704_v34  ;;  %v2734_v30 = vsel %vm2731_vm4, %v2733_v29, %v2729_v41 }
 0x1d2   :  { %v2757_v42 = vsub.f32 1.0, %v2734_v30 }
 0x1d5   :  { %v2603_v9 = vpop.f32.mrf.mxu0  ;;  %v2616_v26 = vpop.f32.mrf.mxu1 }
 0x1d6   :  { %v2604_v27 = vadd.f32 %v2603_v9, %v2591_v60 }
 0x1d8   :  { %v2617_v4 = vadd.f32 %v2616_v26, %v2604_v27 }
 0x1dd   :  { %v2605_v32 = vpop.f32.mrf.mxu0  ;;  %v2618_v33 = vpop.f32.mrf.mxu1 }
 0x1e5   :  { %v2629_v5 = vpop.f32.mrf.mxu2  ;;  %v2642_v10 = vpop.f32.mrf.mxu3 }
 0x1e6   :  { %v2630_v14 = vadd.f32 %v2629_v5, %v2617_v4 }
 0x1e8   :  { %v2643_v11 = vadd.f32 %v2642_v10, %v2630_v14 }
 0x1ea   :  { %v2743_v62 = vadd.f32 %v2739_v15, %v2643_v11 }
 0x1ec   :  { %v2753_v24 = vadd.f32 %v2751_v38, %v2743_v62 }
 0x1ed   :  { %v2631_v37 = vpop.f32.mrf.mxu2  ;;  %v2644_v40 = vpop.f32.mrf.mxu3 }
 0x1ee   :  { %4528 = vtanh.f32 %v2753_v24 }
 0x1f4   :  { %v4529_v43 = vpop.eup %4528 }
 0x1f5   :  { %v2759_v44 = vmul.f32 %v4529_v43, %v2757_v42 }
 0x1f7   :  { %v2761_v47 = vpack.c.bf16 %v2759_v44, %v2759_v44 }
 0x1f9   :  { %2915 = vmatmul.bf16.vlgmr.msrb.gmra.mxu1 %v2761_v47 }
 0x246   :  { %v2903_v48 = vpop.f32.mrf.mxu0 }
 0x247   :  { %v2904_v52 = vadd.f32 %v4509_v51, %v2903_v48 }
 0x24e   :  { %v2905_v50 = vpop.f32.mrf.mxu0 }
 0x276   :  { %v2916_v53 = vpop.f32.mrf.mxu1 }
 0x277   :  { %v2917_v36 = vadd.f32 %v2916_v53, %v2904_v52 }
 0x279   :  { %v2928_v49 = vmul.f32 %v2917_v36, %v2917_v36  ;;  %v2921_v54 = vrot.slane %v2917_v36, 2 }
 0x27b   :  { %v2929_v56 = vsel %vm2924_vm5, %v2928_v49, 0.0  ;;  %v2923_v57 = vmul.f32 %v2921_v54, %v2917_v36  ;;  %v2933_v25 = vsel %vm2932_vm6, %v2928_v49, 0.0 }
 0x27c   :  { %2930 = vadd.xlane.f32.xlu0 %v2929_v56 }
 0x27d   :  { %v2925_v58 = vsel %vm2924_vm5, %v2923_v57, 0.0 }
 0x27e   :  { %v2918_v59 = vpop.f32.mrf.mxu1  ;;  %2926 = vadd.xlane.f32.xlu1 %v2925_v58 }
 0x284   :  { %2934 = vadd.xlane.f32.xlu0 %v2933_v25 }
 0x2ef   :  { %v2931_v63 = vpop.xlane.xlu0 %2930 }
 0x2f0   :  { %v2936_v0 = vmax.f32 %v2931_v63, 1e-16 }
 0x2f1   :  { %v2927_v26 = vpop.xlane.xlu1 %2926 }
 0x2f2   :  { %4530 = vrsqrt.f32 %v2936_v0  ;;  %vm2943_vm8 = vweird.f32 %v2936_v0 }
 0x2f7   :  { %v2935_v2 = vpop.xlane.xlu0 %2934 }
 0x2f8   :  { %v4531_v6 = vpop.eup %4530  ;;  %v2947_v16 = vmax.f32 %v2935_v2, 1e-16 }
 0x2f9   :  { %v2938_v17 = vmul.f32 %v4531_v6, %v2936_v0  ;;  %vm2944_vm7 = vweird.f32 %v4531_v6 }
 0x2fa   :  { %4532 = vrsqrt.f32 %v2947_v16  ;;  %vm2945_vm10 = vmor %vm2943_vm8, %vm2944_vm7  ;;  %vm2954_vm11 = vweird.f32 %v2947_v16 }
 0x2fb   :  { %v2939_v19 = vmul.f32 %v4531_v6, %v2938_v17 }
 0x2fd   :  { %v2940_v7 = vmul.f32 0.5, %v2939_v19 }
 0x2ff   :  { %v2941_v20 = vsub.f32 1.5, %v2940_v7 }
 0x300   :  { %v4533_v8 = vpop.eup %4532 }
 0x301   :  { %v2949_v28 = vmul.f32 %v4533_v8, %v2947_v16  ;;  %v2942_v22 = vmul.f32 %v4531_v6, %v2941_v20  ;;  %vm2955_vm9 = vweird.f32 %v4533_v8 }
 0x302   :  { %vm2956_vm12 = vmor %vm2954_vm11, %vm2955_vm9 }
 0x303   :  { %v2950_v21 = vmul.f32 %v4533_v8, %v2949_v28  ;;  %v2946_v60 = vsel %vm2945_vm10, %v4531_v6, %v2942_v22 }
 0x304   :  { %v2958_v45 = vmul.f32 %v2946_v60, %v2927_v26 }
 0x305   :  { %v2951_v23 = vmul.f32 0.5, %v2950_v21 }
 0x307   :  { %v2952_v55 = vsub.f32 1.5, %v2951_v23 }
 0x309   :  { %v2953_v9 = vmul.f32 %v4533_v8, %v2952_v55 }
 0x30b   :  { %v2957_v27 = vsel %vm2956_vm12, %v4533_v8, %v2953_v9 }
 0x30c   :  { %v2960_v46 = vrot.slane %v2957_v27, 2 }
 0x30e   :  { %v2962_v3 = vmul.f32 %v2960_v46, %v2958_v45 }
 0x310   :  { %v2963_v18 = vmul.f32 2.5, %v2962_v3 }
 0x312   :  { %v2964_v4 = vadd.f32 2.5, %v2963_v18 }
 0x314   :  { %2966 = vst.msk [vmem:[%s5108_s8] sm:$0x3] %vm2965_vm13, %v2964_v4 }
 0x315   :  { %2971 = vsyncpa [#allocation4], 1 }
 0x316   :  { %2972 = vsyncpa [#allocation6], 1 }
 0x317   :  { %2973 = vsyncpa [#allocation9], 1 }
 0x318   :  { %2974 = vsyncpa [#allocation12], 1 }

</bundles_post_ra>
